<compile_context>
chip_gen: v6e
topology: v6e:2x2x1
jax: 0.10.0
libtpu: 0.0.40
codegen_flags: <defaults>
</compile_context>

<pallas_src>
import functools

import jax
import jax.numpy as jnp
from jax.experimental import pallas as pl
from jax.experimental.pallas import tpu as pltpu

VMEM = pltpu.MemorySpace.VMEM


# --------------------------- hoisted encoder input projection ---------------------------
def _proj_bias_kernel(x_ref, w_ref, b_ref, o_ref):
    o_ref[...] = (jnp.dot(x_ref[...], w_ref[...], preferred_element_type=jnp.float32)
                  + b_ref[...])


def input_projection(x2d, w_t, b_row):
    M = x2d.shape[0]
    N_out = w_t.shape[1]
    return pl.pallas_call(
        _proj_bias_kernel,
        out_shape=jax.ShapeDtypeStruct((M, N_out), jnp.float32),
        in_specs=[pl.BlockSpec(memory_space=VMEM)] * 3,
        out_specs=pl.BlockSpec(memory_space=VMEM),
    )(x2d, w_t, b_row)


# --------------------------- fused encoder: whole time loop in one kernel ---------------------------
def _encoder_kernel(xproj_ref, whh_ref, mask_ref, w1e_ref, b1_ref,
                    enc_hs_ref, enc_proj_ref, h_scr, c_scr):
    @pl.when(pl.program_id(0) == 0)
    def _():
        h_scr[...] = jnp.zeros_like(h_scr)
        c_scr[...] = jnp.zeros_like(c_scr)

    h = h_scr[...]
    c = c_scr[...]

    # gate-split: each gate is its own (B, Eh) tensor -> no intra-vreg lane slicing.
    def gate(k):
        return xproj_ref[0, k] + jnp.dot(h, whh_ref[k], preferred_element_type=jnp.float32)

    i_g = jax.nn.sigmoid(gate(0))
    f_g = jax.nn.sigmoid(gate(1))
    g_g = jnp.tanh(gate(2))
    o_g = jax.nn.sigmoid(gate(3))
    c_new = f_g * c + i_g * g_g
    h_new = o_g * jnp.tanh(c_new)
    h_scr[...] = h_new
    c_scr[...] = c_new

    h_masked = h_new * mask_ref[0]          # pack/pad_packed semantics: padded steps -> 0
    enc_hs_ref[0] = h_masked
    # loop-invariant enc-side half of attn_1 (bias folded here), emitted per step.
    enc_proj_ref[0] = (jnp.dot(h_masked, w1e_ref[...], preferred_element_type=jnp.float32)
                       + b1_ref[...])


def run_encoder(xproj, mask_nb1, whh_g, w1e_t, b1_row):
    N, _, B, Eh = xproj.shape
    Dh = w1e_t.shape[1]
    grid_spec = pltpu.PrefetchScalarGridSpec(
        num_scalar_prefetch=0,
        grid=(N,),
        in_specs=[
            pl.BlockSpec((1, 4, B, Eh), lambda t: (t, 0, 0, 0)),   # per-step hoisted x-proj
            pl.BlockSpec((4, Eh, Eh), lambda t: (0, 0, 0)),        # W_hh (gate-split), resident
            pl.BlockSpec((1, B, 1), lambda t: (t, 0, 0)),          # per-step validity mask
            pl.BlockSpec((Eh, Dh), lambda t: (0, 0)),              # attn_1 enc half, resident
            pl.BlockSpec((1, Dh), lambda t: (0, 0)),               # attn_1 bias, resident
        ],
        out_specs=(
            pl.BlockSpec((1, B, Eh), lambda t: (t, 0, 0)),
            pl.BlockSpec((1, B, Dh), lambda t: (t, 0, 0)),
        ),
        scratch_shapes=[pltpu.VMEM((B, Eh), jnp.float32),
                        pltpu.VMEM((B, Eh), jnp.float32)],
    )
    return pl.pallas_call(
        _encoder_kernel,
        out_shape=(jax.ShapeDtypeStruct((N, B, Eh), jnp.float32),
                   jax.ShapeDtypeStruct((N, B, Dh), jnp.float32)),
        grid_spec=grid_spec,
        compiler_params=pltpu.CompilerParams(
            dimension_semantics=("arbitrary",),
            vmem_limit_bytes=16 * 1024 * 1024),
    )(xproj, whh_g, mask_nb1, w1e_t, b1_row)


# --------------------------- fused decoder: LSTM + attention + context + MLP, whole loop ---------------------------
def _decoder_kernel(enc_hs_ref, enc_proj_ref, mask_ref, wh_ref, wc_ref, b_ref,
                    w1d_ref, w2_ref, fc1h_ref, fc1c_ref, fc1b_ref, fc2_ref, fc2b_ref,
                    attn_out_ref, out_ref, h_scr, c_scr, ctx_scr):
    B, Dh = h_scr.shape

    def attend(dec_proj):                                               # dec_proj: (B, Dh)
        hidden = jnp.tanh(enc_proj_ref[...] + dec_proj[:, None, :])     # (B, N, Dh)
        scores = jnp.sum(hidden * w2_ref[...], axis=-1)                 # (B, N), lane-dense
        scores = mask_ref[...] * scores                                 # mask-by-multiply (torch)
        m = jnp.max(scores, axis=-1, keepdims=True)                     # softmax over enc_n
        e = jnp.exp(scores - m)
        attn = e / jnp.sum(e, axis=-1, keepdims=True)
        ctx = jnp.sum(attn[:, :, None] * enc_hs_ref[...], axis=1)       # (B, Eh)
        return attn, ctx

    @pl.when(pl.program_id(0) == 0)
    def _():
        h_scr[...] = jnp.zeros_like(h_scr)
        c_scr[...] = jnp.zeros_like(c_scr)
        _, ctx0 = attend(jnp.zeros((B, Dh), jnp.float32))   # initial attention with dec_h = 0
        ctx_scr[...] = ctx0

    h_prev = h_scr[...]
    c_prev = c_scr[...]
    ctx_prev = ctx_scr[...]

    # dec_in = [h_prev | ctx_prev]; the dec_h half of W_ih is pre-folded into wh (with W_hh),
    # so the cell is two matmuls per gate and no in-kernel concat / lane slicing.
    def gate(k):
        return (jnp.dot(h_prev, wh_ref[k], preferred_element_type=jnp.float32)
                + jnp.dot(ctx_prev, wc_ref[k], preferred_element_type=jnp.float32)
                + b_ref[k])

    i_g = jax.nn.sigmoid(gate(0))
    f_g = jax.nn.sigmoid(gate(1))
    g_g = jnp.tanh(gate(2))
    o_g = jax.nn.sigmoid(gate(3))
    c_new = f_g * c_prev + i_g * g_g
    h_new = o_g * jnp.tanh(c_new)

    attn, ctx = attend(jnp.dot(h_new, w1d_ref[...], preferred_element_type=jnp.float32))

    h_scr[...] = h_new
    c_scr[...] = c_new
    ctx_scr[...] = ctx

    # output MLP on the new dec_in = [h_new | ctx]; fc1 split by input half (no concat).
    mlp_h = jnp.maximum(
        jnp.dot(h_new, fc1h_ref[...], preferred_element_type=jnp.float32)
        + jnp.dot(ctx, fc1c_ref[...], preferred_element_type=jnp.float32)
        + fc1b_ref[...], 0.0)
    out_ref[0] = jnp.dot(mlp_h, fc2_ref[...], preferred_element_type=jnp.float32) + fc2b_ref[...]
    attn_out_ref[0] = attn


def run_decoder(enc_hs_bne, enc_proj_bnd, mask_bn, kp, n_step, target_size):
    B, N, Eh = enc_hs_bne.shape
    Dh = enc_proj_bnd.shape[2]
    D = Eh + Dh
    T = target_size
    grid_spec = pltpu.PrefetchScalarGridSpec(
        num_scalar_prefetch=0,
        grid=(n_step,),
        in_specs=[
            pl.BlockSpec((B, N, Eh), lambda i: (0, 0, 0)),     # enc_hs, resident
            pl.BlockSpec((B, N, Dh), lambda i: (0, 0, 0)),     # enc-side attn proj (+bias), resident
            pl.BlockSpec((B, N), lambda i: (0, 0)),            # mask, resident
            pl.BlockSpec((4, Dh, Dh), lambda i: (0, 0, 0)),    # W_ih(h-half)+W_hh, gate-split
            pl.BlockSpec((4, Eh, Dh), lambda i: (0, 0, 0)),    # W_ih(ctx-half), gate-split
            pl.BlockSpec((4, 1, Dh), lambda i: (0, 0, 0)),     # biases, gate-split
            pl.BlockSpec((Dh, Dh), lambda i: (0, 0)),          # attn_1 dec half
            pl.BlockSpec((1, Dh), lambda i: (0, 0)),           # attn_2 weight
            pl.BlockSpec((Dh, D), lambda i: (0, 0)),           # fc1 (h-half)
            pl.BlockSpec((Eh, D), lambda i: (0, 0)),           # fc1 (ctx-half)
            pl.BlockSpec((1, D), lambda i: (0, 0)),            # fc1 bias
            pl.BlockSpec((D, T), lambda i: (0, 0)),            # fc2
            pl.BlockSpec((1, T), lambda i: (0, 0)),            # fc2 bias
        ],
        out_specs=(
            pl.BlockSpec((1, B, N), lambda i: (i, 0, 0)),      # per-step attention weights
            pl.BlockSpec((1, B, T), lambda i: (i, 0, 0)),      # per-step decoder output
        ),
        scratch_shapes=[pltpu.VMEM((B, Dh), jnp.float32),      # dec_h
                        pltpu.VMEM((B, Dh), jnp.float32),      # dec_c
                        pltpu.VMEM((B, Eh), jnp.float32)],     # context (carried dec_in half)
    )
    return pl.pallas_call(
        _decoder_kernel,
        out_shape=(jax.ShapeDtypeStruct((n_step, B, N), jnp.float32),
                   jax.ShapeDtypeStruct((n_step, B, T), jnp.float32)),
        grid_spec=grid_spec,
        compiler_params=pltpu.CompilerParams(
            dimension_semantics=("arbitrary",),
            vmem_limit_bytes=16 * 1024 * 1024),
    )(enc_hs_bne, enc_proj_bnd, mask_bn, kp['dec_wh_g'], kp['dec_wc_g'], kp['dec_b_g'],
      kp['w1d_t'], kp['attn2_w_row'], kp['fc1_h_t'], kp['fc1_c_t'], kp['fc1_b_row'],
      kp['fc2_t'], kp['fc2_b_row'])


# --------------------------- parameters (deterministic, synthetic, PyTorch layout) ---------------------------
def init_params(key, cfg):
    ks = jax.random.split(key, 16)
    src = cfg['source_size']
    Eh = cfg['encoder_hidden_size']
    Dh = cfg['decoder_hidden_size']
    Din = cfg['decoder_input_size']
    T = cfg['target_size']
    s = 0.1

    def w(k, shape):
        return s * jax.random.normal(k, shape, jnp.float32)

    raw = {}
    raw['enc_wih'] = w(ks[0], (4 * Eh, src))        # PyTorch (4H, in), gate order i,f,g,o
    raw['enc_whh'] = w(ks[1], (4 * Eh, Eh))
    raw['enc_b'] = w(ks[2], (4 * Eh,)) + w(ks[3], (4 * Eh,))
    raw['dec_wih'] = w(ks[4], (4 * Dh, Din))
    raw['dec_whh'] = w(ks[5], (4 * Dh, Dh))
    raw['dec_b'] = w(ks[6], (4 * Dh,)) + w(ks[7], (4 * Dh,))
    raw['attn1_w'] = w(ks[8], (Dh, 2 * Eh))         # cat order in torch is [enc | dec]
    raw['attn1_b'] = w(ks[9], (Dh,))
    raw['attn2_w'] = w(ks[10], (1, Dh))             # bias=False
    D = Eh + Dh
    raw['fc1_w'] = w(ks[11], (D, D))
    raw['fc1_b'] = w(ks[12], (D,))
    raw['fc2_w'] = w(ks[13], (T, D))
    raw['fc2_b'] = w(ks[14], (T,))
    return raw


def prepare_params(raw, cfg):
    """Transform PyTorch-layout weights into the gate-split / pre-transposed kernel layouts."""
    Eh = cfg['encoder_hidden_size']
    Dh = cfg['decoder_hidden_size']
    Din = cfg['decoder_input_size']
    T = cfg['target_size']
    D = Eh + Dh
    p = {}
    # encoder: (4H, in) -> (in, 4H) for the hoisted whole-sequence input projection; bias folded there.
    p['enc_wih_t'] = raw['enc_wih'].T                                    # (src, 4Eh)
    p['enc_b_row'] = raw['enc_b'].reshape(1, 4 * Eh)
    # recurrent weights gate-split: (4, in, out)
    p['enc_whh_g'] = raw['enc_whh'].reshape(4, Eh, Eh).transpose(0, 2, 1)
    # attention: attn_1 = Linear(2*Eh, Dh) split into enc/dec halves; attn_2 = Linear(Dh, 1, no bias)
    p['w1e_t'] = raw['attn1_w'][:, :Eh].T                                # (Eh, Dh)
    p['w1d_t'] = raw['attn1_w'][:, Eh:].T                                # (Dh, Dh)
    p['attn1_b_row'] = raw['attn1_b'].reshape(1, Dh)
    p['attn2_w_row'] = raw['attn2_w'].reshape(1, Dh)
    # decoder LSTM: dec_in = [dec_h | context]; split W_ih by gate and by input half, fold the
    # dec_h half together with W_hh (both multiply dec_h_{t-1}); all stored as (in, out).
    wih_g = raw['dec_wih'].reshape(4, Dh, Din)                           # (gate, out, in)
    whh_g = raw['dec_whh'].reshape(4, Dh, Dh)
    p['dec_wh_g'] = (wih_g[:, :, :Dh] + whh_g).transpose(0, 2, 1)        # (4, Dh, Dh)
    p['dec_wc_g'] = wih_g[:, :, Dh:].transpose(0, 2, 1)                  # (4, Eh, Dh)
    p['dec_b_g'] = raw['dec_b'].reshape(4, 1, Dh)
    # output MLP: fc1 split by [dec_h | context] input halves; pre-transposed to (in, out).
    p['fc1_h_t'] = raw['fc1_w'][:, :Dh].T                                # (Dh, D)
    p['fc1_c_t'] = raw['fc1_w'][:, Dh:].T                                # (Eh, D)
    p['fc1_b_row'] = raw['fc1_b'].reshape(1, D)
    p['fc2_t'] = raw['fc2_w'].T                                          # (D, T)
    p['fc2_b_row'] = raw['fc2_b'].reshape(1, T)
    return p


# --------------------------- forward ---------------------------
def translation_forward(kp, cfg, source, target, lengths):
    # source: (B, N, source_size), target: (B, n_step, target_size), lengths: (B,) int32
    B, N, src = source.shape
    n_step = target.shape[1]
    Eh = cfg['encoder_hidden_size']

    source_t = jnp.transpose(source, (1, 0, 2))                         # (N, B, src)
    valid_bn = jnp.arange(N)[None, :] < lengths[:, None]                # (B, N) bool
    mask_bn = valid_bn.astype(jnp.float32)
    mask_nb1 = mask_bn.T[:, :, None]                                    # (N, B, 1)

    # hoisted encoder input projection: one matmul over the whole sequence (bias folded in).
    xproj_flat = input_projection(source_t.reshape(N * B, src),
                                  kp['enc_wih_t'], kp['enc_b_row'])     # (N*B, 4Eh)
    xproj = xproj_flat.reshape(N, B, 4, Eh).transpose(0, 2, 1, 3)       # (N, 4, B, Eh)

    # nn.LayerNorm(encoder_hidden_size) is applied over the enc_n axis in torch and raises
    # whenever enc_n != encoder_hidden_size, so the except-branch skips it (as here).
    enc_hs_nbe, enc_proj_nbd = run_encoder(xproj, mask_nb1, kp['enc_whh_g'],
                                           kp['w1e_t'], kp['attn1_b_row'])

    # layout plumbing for the lane-dense (B, N, .) decoder kernel
    enc_hs_bne = jnp.transpose(enc_hs_nbe, (1, 0, 2))                   # (B, N, Eh)
    enc_proj_bnd = jnp.transpose(enc_proj_nbd, (1, 0, 2))               # (B, N, Dh)

    all_attn_sbn, all_out_sbt = run_decoder(enc_hs_bne, enc_proj_bnd, mask_bn, kp,
                                            n_step, cfg['target_size'])

    all_dec_out = jnp.transpose(all_out_sbt, (1, 0, 2))                 # (B, n_step, target_size)
    all_attn_weights = jnp.transpose(all_attn_sbn, (1, 0, 2))           # (B, n_step, N)

    # final masking (masked_fill semantics)
    all_dec_out = jnp.where(valid_bn[:, :, None], all_dec_out, 0.0)
    all_attn_weights = jnp.where(valid_bn[:, None, :], all_attn_weights, 1e-10)  # key padded
    all_attn_weights = jnp.where(valid_bn[:, :, None], all_attn_weights, 1e-10)  # query padded
    return all_dec_out, all_attn_weights


if __name__ == "__main__":
    cfg = dict(source_size=16, encoder_hidden_size=32, encoder_num_layers=1,
               encoder_dropout=0.0, decoder_input_size=64, decoder_hidden_size=32,
               decoder_num_layers=1, decoder_dropout=0.0, target_size=16)
    B, N = 2, 8

    key = jax.random.PRNGKey(0)
    k_par, k_src, k_tgt = jax.random.split(key, 3)
    raw = init_params(k_par, cfg)
    kp = prepare_params(raw, cfg)

    source = jax.random.normal(k_src, (B, N, cfg['source_size']), jnp.float32)
    target = jax.random.normal(k_tgt, (B, N, cfg['target_size']), jnp.float32)
    lengths = jnp.array([8, 5], jnp.int32)   # sorted desc, as pack_padded_sequence requires

    fwd = jax.jit(functools.partial(translation_forward, kp, cfg))
    all_dec_out, all_attn = fwd(source, target, lengths)
    jax.block_until_ready((all_dec_out, all_attn))

    assert all_dec_out.shape == (B, N, cfg['target_size'])
    assert all_attn.shape == (B, N, N)
    assert bool(jnp.all(jnp.isfinite(all_dec_out))) and bool(jnp.all(jnp.isfinite(all_attn)))
    # TODO(synk): encoder/decoder dropout and num_layers > 1 not modeled (config uses 1 layer, p=0.0).
    print("KERNEL_OK")
</pallas_src>

<mosaic_0001>
module attributes {stable_mosaic.version = 11 : i64} {
  func.func @_proj_bias_kernel(%arg0: memref<16x16xf32, #tpu.memory_space<vmem>>, %arg1: memref<16x128xf32, #tpu.memory_space<vmem>>, %arg2: memref<1x128xf32, #tpu.memory_space<vmem>>, %arg3: memref<16x128xf32, #tpu.memory_space<vmem>>) attributes {dimension_semantics = [], scalar_prefetch = 0 : i64, scratch_operands = 0 : i64, tpu.core_type = #tpu.core_type<tc>} {
    %c0 = arith.constant 0 : index
    %c0_0 = arith.constant 0 : index
    %0 = vector.load %arg0[%c0, %c0_0] : memref<16x16xf32, #tpu.memory_space<vmem>>, vector<16x16xf32>
    %c0_1 = arith.constant 0 : index
    %c0_2 = arith.constant 0 : index
    %1 = vector.load %arg1[%c0_1, %c0_2] : memref<16x128xf32, #tpu.memory_space<vmem>>, vector<16x128xf32>
    %cst = arith.constant dense<0.000000e+00> : vector<16x128xf32>
    %2 = tpu.matmul %0, %1, %cst {dimension_numbers = #tpu.dot_dimension_numbers<[1], [0], [0], [1], [0, 0, 1, 1], [], []>} : vector<16x16xf32>, vector<16x128xf32>, vector<16x128xf32> -> vector<16x128xf32>
    %c0_3 = arith.constant 0 : index
    %c0_4 = arith.constant 0 : index
    %3 = vector.load %arg2[%c0_3, %c0_4] : memref<1x128xf32, #tpu.memory_space<vmem>>, vector<1x128xf32>
    %4 = vector.broadcast %3 : vector<1x128xf32> to vector<16x128xf32>
    %5 = arith.addf %2, %4 : vector<16x128xf32>
    %c0_5 = arith.constant 0 : index
    %c0_6 = arith.constant 0 : index
    %6 = vector.load %arg3[%c0_5, %c0_6] : memref<16x128xf32, #tpu.memory_space<vmem>>, vector<16x128xf32>
    tpu.vector_store %arg3[%c0_5, %c0_6], %5 {strides = array<i32>} : memref<16x128xf32, #tpu.memory_space<vmem>>, vector<16x128xf32>,
    return
  }
}

module attributes {stable_mosaic.version = 11 : i64} {
  func.func @_encoder_kernel(%arg0: i32, %arg1: memref<1x4x2x32xf32, #tpu.memory_space<vmem>>, %arg2: memref<4x32x32xf32, #tpu.memory_space<vmem>>, %arg3: memref<1x2x1xf32, #tpu.memory_space<vmem>>, %arg4: memref<32x32xf32, #tpu.memory_space<vmem>>, %arg5: memref<1x32xf32, #tpu.memory_space<vmem>>, %arg6: memref<1x2x32xf32, #tpu.memory_space<vmem>>, %arg7: memref<1x2x32xf32, #tpu.memory_space<vmem>>, %arg8: memref<2x32xf32, #tpu.memory_space<vmem>>, %arg9: memref<2x32xf32, #tpu.memory_space<vmem>>) attributes {dimension_semantics = [#tpu.dimension_semantics<arbitrary>], iteration_bounds = array<i64: 8>, scalar_prefetch = 0 : i64, scratch_operands = 2 : i64, tpu.core_type = #tpu.core_type<tc>, window_params = [{transform_indices = @transform_0, window_bounds = array<i64: 1, 4, 2, 32>}, {pipeline_mode = #tpu.pipeline_mode<synchronous>, transform_indices = @transform_1, window_bounds = array<i64: 4, 32, 32>}, {transform_indices = @transform_2, window_bounds = array<i64: 1, 2, 1>}, {pipeline_mode = #tpu.pipeline_mode<synchronous>, transform_indices = @transform_3, window_bounds = array<i64: 32, 32>}, {pipeline_mode = #tpu.pipeline_mode<synchronous>, transform_indices = @transform_4, window_bounds = array<i64: 1, 32>}, {transform_indices = @transform_5, window_bounds = array<i64: 1, 2, 32>}, {transform_indices = @transform_6, window_bounds = array<i64: 1, 2, 32>}]} {
    %c0_i32 = arith.constant 0 : i32
    %0 = arith.cmpi eq, %arg0, %c0_i32 : i32
    %1 = arith.extui %0 : i1 to i32
    %c0_i32_0 = arith.constant 0 : i32
    %2 = arith.cmpi ne, %1, %c0_i32_0 : i32
    scf.if %2 {
      %cst_53 = arith.constant 0.000000e+00 : f32
      %67 = vector.broadcast %cst_53 : f32 to vector<2x32xf32>
      %c0_54 = arith.constant 0 : index
      %c0_55 = arith.constant 0 : index
      %68 = vector.load %arg8[%c0_54, %c0_55] : memref<2x32xf32, #tpu.memory_space<vmem>>, vector<2x32xf32>
      tpu.vector_store %arg8[%c0_54, %c0_55], %67 {strides = array<i32>} : memref<2x32xf32, #tpu.memory_space<vmem>>, vector<2x32xf32>,
      %cst_56 = arith.constant 0.000000e+00 : f32
      %69 = vector.broadcast %cst_56 : f32 to vector<2x32xf32>
      %c0_57 = arith.constant 0 : index
      %c0_58 = arith.constant 0 : index
      %70 = vector.load %arg9[%c0_57, %c0_58] : memref<2x32xf32, #tpu.memory_space<vmem>>, vector<2x32xf32>
      tpu.vector_store %arg9[%c0_57, %c0_58], %69 {strides = array<i32>} : memref<2x32xf32, #tpu.memory_space<vmem>>, vector<2x32xf32>,
    } else {
    }
    %c0 = arith.constant 0 : index
    %c0_1 = arith.constant 0 : index
    %3 = vector.load %arg8[%c0, %c0_1] : memref<2x32xf32, #tpu.memory_space<vmem>>, vector<2x32xf32>
    %c0_2 = arith.constant 0 : index
    %c0_3 = arith.constant 0 : index
    %4 = vector.load %arg9[%c0_2, %c0_3] : memref<2x32xf32, #tpu.memory_space<vmem>>, vector<2x32xf32>
    %c0_4 = arith.constant 0 : index
    %c0_5 = arith.constant 0 : index
    %c0_6 = arith.constant 0 : index
    %c0_7 = arith.constant 0 : index
    %5 = vector.load %arg1[%c0_4, %c0_5, %c0_6, %c0_7] : memref<1x4x2x32xf32, #tpu.memory_space<vmem>>, vector<1x1x2x32xf32>
    %6 = vector.shape_cast %5 : vector<1x1x2x32xf32> to vector<2x32xf32>
    %c0_8 = arith.constant 0 : index
    %c0_9 = arith.constant 0 : index
    %c0_10 = arith.constant 0 : index
    %7 = vector.load %arg2[%c0_8, %c0_9, %c0_10] : memref<4x32x32xf32, #tpu.memory_space<vmem>>, vector<1x32x32xf32>
    %8 = vector.shape_cast %7 : vector<1x32x32xf32> to vector<32x32xf32>
    %cst = arith.constant dense<0.000000e+00> : vector<2x32xf32>
    %9 = tpu.matmul %3, %8, %cst {dimension_numbers = #tpu.dot_dimension_numbers<[1], [0], [0], [1], [0, 0, 1, 1], [], []>} : vector<2x32xf32>, vector<32x32xf32>, vector<2x32xf32> -> vector<2x32xf32>
    %10 = arith.addf %6, %9 : vector<2x32xf32>
    %11 = arith.negf %10 : vector<2x32xf32>
    %12 = math.exp %11 : vector<2x32xf32>
    %cst_11 = arith.constant 1.000000e+00 : f32
    %13 = vector.broadcast %cst_11 : f32 to vector<2x32xf32>
    %14 = arith.addf %13, %12 : vector<2x32xf32>
    %15 = arith.divf %13, %14 : vector<2x32xf32>
    %c0_12 = arith.constant 0 : index
    %c1 = arith.constant 1 : index
    %c0_13 = arith.constant 0 : index
    %c0_14 = arith.constant 0 : index
    %16 = vector.load %arg1[%c0_12, %c1, %c0_13, %c0_14] : memref<1x4x2x32xf32, #tpu.memory_space<vmem>>, vector<1x1x2x32xf32>
    %17 = vector.shape_cast %16 : vector<1x1x2x32xf32> to vector<2x32xf32>
    %c1_15 = arith.constant 1 : index
    %c0_16 = arith.constant 0 : index
    %c0_17 = arith.constant 0 : index
    %18 = vector.load %arg2[%c1_15, %c0_16, %c0_17] : memref<4x32x32xf32, #tpu.memory_space<vmem>>, vector<1x32x32xf32>
    %19 = vector.shape_cast %18 : vector<1x32x32xf32> to vector<32x32xf32>
    %cst_18 = arith.constant dense<0.000000e+00> : vector<2x32xf32>
    %20 = tpu.matmul %3, %19, %cst_18 {dimension_numbers = #tpu.dot_dimension_numbers<[1], [0], [0], [1], [0, 0, 1, 1], [], []>} : vector<2x32xf32>, vector<32x32xf32>, vector<2x32xf32> -> vector<2x32xf32>
    %21 = arith.addf %17, %20 : vector<2x32xf32>
    %22 = arith.negf %21 : vector<2x32xf32>
    %23 = math.exp %22 : vector<2x32xf32>
    %cst_19 = arith.constant 1.000000e+00 : f32
    %24 = vector.broadcast %cst_19 : f32 to vector<2x32xf32>
    %25 = arith.addf %24, %23 : vector<2x32xf32>
    %26 = arith.divf %24, %25 : vector<2x32xf32>
    %c0_20 = arith.constant 0 : index
    %c2 = arith.constant 2 : index
    %c0_21 = arith.constant 0 : index
    %c0_22 = arith.constant 0 : index
    %27 = vector.load %arg1[%c0_20, %c2, %c0_21, %c0_22] : memref<1x4x2x32xf32, #tpu.memory_space<vmem>>, vector<1x1x2x32xf32>
    %28 = vector.shape_cast %27 : vector<1x1x2x32xf32> to vector<2x32xf32>
    %c2_23 = arith.constant 2 : index
    %c0_24 = arith.constant 0 : index
    %c0_25 = arith.constant 0 : index
    %29 = vector.load %arg2[%c2_23, %c0_24, %c0_25] : memref<4x32x32xf32, #tpu.memory_space<vmem>>, vector<1x32x32xf32>
    %30 = vector.shape_cast %29 : vector<1x32x32xf32> to vector<32x32xf32>
    %cst_26 = arith.constant dense<0.000000e+00> : vector<2x32xf32>
    %31 = tpu.matmul %3, %30, %cst_26 {dimension_numbers = #tpu.dot_dimension_numbers<[1], [0], [0], [1], [0, 0, 1, 1], [], []>} : vector<2x32xf32>, vector<32x32xf32>, vector<2x32xf32> -> vector<2x32xf32>
    %32 = arith.addf %28, %31 : vector<2x32xf32>
    %33 = math.tanh %32 : vector<2x32xf32>
    %c0_27 = arith.constant 0 : index
    %c3 = arith.constant 3 : index
    %c0_28 = arith.constant 0 : index
    %c0_29 = arith.constant 0 : index
    %34 = vector.load %arg1[%c0_27, %c3, %c0_28, %c0_29] : memref<1x4x2x32xf32, #tpu.memory_space<vmem>>, vector<1x1x2x32xf32>
    %35 = vector.shape_cast %34 : vector<1x1x2x32xf32> to vector<2x32xf32>
    %c3_30 = arith.constant 3 : index
    %c0_31 = arith.constant 0 : index
    %c0_32 = arith.constant 0 : index
    %36 = vector.load %arg2[%c3_30, %c0_31, %c0_32] : memref<4x32x32xf32, #tpu.memory_space<vmem>>, vector<1x32x32xf32>
    %37 = vector.shape_cast %36 : vector<1x32x32xf32> to vector<32x32xf32>
    %cst_33 = arith.constant dense<0.000000e+00> : vector<2x32xf32>
    %38 = tpu.matmul %3, %37, %cst_33 {dimension_numbers = #tpu.dot_dimension_numbers<[1], [0], [0], [1], [0, 0, 1, 1], [], []>} : vector<2x32xf32>, vector<32x32xf32>, vector<2x32xf32> -> vector<2x32xf32>
    %39 = arith.addf %35, %38 : vector<2x32xf32>
    %40 = arith.negf %39 : vector<2x32xf32>
    %41 = math.exp %40 : vector<2x32xf32>
    %cst_34 = arith.constant 1.000000e+00 : f32
    %42 = vector.broadcast %cst_34 : f32 to vector<2x32xf32>
    %43 = arith.addf %42, %41 : vector<2x32xf32>
    %44 = arith.divf %42, %43 : vector<2x32xf32>
    %45 = arith.mulf %26, %4 : vector<2x32xf32>
    %46 = arith.mulf %15, %33 : vector<2x32xf32>
    %47 = arith.addf %45, %46 : vector<2x32xf32>
    %48 = math.tanh %47 : vector<2x32xf32>
    %49 = arith.mulf %44, %48 : vector<2x32xf32>
    %c0_35 = arith.constant 0 : index
    %c0_36 = arith.constant 0 : index
    %50 = vector.load %arg8[%c0_35, %c0_36] : memref<2x32xf32, #tpu.memory_space<vmem>>, vector<2x32xf32>
    tpu.vector_store %arg8[%c0_35, %c0_36], %49 {strides = array<i32>} : memref<2x32xf32, #tpu.memory_space<vmem>>, vector<2x32xf32>,
    %c0_37 = arith.constant 0 : index
    %c0_38 = arith.constant 0 : index
    %51 = vector.load %arg9[%c0_37, %c0_38] : memref<2x32xf32, #tpu.memory_space<vmem>>, vector<2x32xf32>
    tpu.vector_store %arg9[%c0_37, %c0_38], %47 {strides = array<i32>} : memref<2x32xf32, #tpu.memory_space<vmem>>, vector<2x32xf32>,
    %c0_39 = arith.constant 0 : index
    %c0_40 = arith.constant 0 : index
    %c0_41 = arith.constant 0 : index
    %52 = vector.load %arg3[%c0_39, %c0_40, %c0_41] : memref<1x2x1xf32, #tpu.memory_space<vmem>>, vector<1x2x1xf32>
    %53 = vector.shape_cast %52 : vector<1x2x1xf32> to vector<2x1xf32>
    %54 = vector.broadcast %53 : vector<2x1xf32> to vector<2x32xf32>
    %55 = arith.mulf %49, %54 : vector<2x32xf32>
    %c0_42 = arith.constant 0 : index
    %c0_43 = arith.constant 0 : index
    %c0_44 = arith.constant 0 : index
    %56 = vector.load %arg6[%c0_42, %c0_43, %c0_44] : memref<1x2x32xf32, #tpu.memory_space<vmem>>, vector<1x2x32xf32>
    %57 = vector.shape_cast %56 : vector<1x2x32xf32> to vector<2x32xf32>
    %58 = vector.shape_cast %55 : vector<2x32xf32> to vector<1x2x32xf32>
    tpu.vector_store %arg6[%c0_42, %c0_43, %c0_44], %58 {strides = array<i32>} : memref<1x2x32xf32, #tpu.memory_space<vmem>>, vector<1x2x32xf32>,
    %c0_45 = arith.constant 0 : index
    %c0_46 = arith.constant 0 : index
    %59 = vector.load %arg4[%c0_45, %c0_46] : memref<32x32xf32, #tpu.memory_space<vmem>>, vector<32x32xf32>
    %cst_47 = arith.constant dense<0.000000e+00> : vector<2x32xf32>
    %60 = tpu.matmul %55, %59, %cst_47 {dimension_numbers = #tpu.dot_dimension_numbers<[1], [0], [0], [1], [0, 0, 1, 1], [], []>} : vector<2x32xf32>, vector<32x32xf32>, vector<2x32xf32> -> vector<2x32xf32>
    %c0_48 = arith.constant 0 : index
    %c0_49 = arith.constant 0 : index
    %61 = vector.load %arg5[%c0_48, %c0_49] : memref<1x32xf32, #tpu.memory_space<vmem>>, vector<1x32xf32>
    %62 = vector.broadcast %61 : vector<1x32xf32> to vector<2x32xf32>
    %63 = arith.addf %60, %62 : vector<2x32xf32>
    %c0_50 = arith.constant 0 : index
    %c0_51 = arith.constant 0 : index
    %c0_52 = arith.constant 0 : index
    %64 = vector.load %arg7[%c0_50, %c0_51, %c0_52] : memref<1x2x32xf32, #tpu.memory_space<vmem>>, vector<1x2x32xf32>
    %65 = vector.shape_cast %64 : vector<1x2x32xf32> to vector<2x32xf32>
    %66 = vector.shape_cast %63 : vector<2x32xf32> to vector<1x2x32xf32>
    tpu.vector_store %arg7[%c0_50, %c0_51, %c0_52], %66 {strides = array<i32>} : memref<1x2x32xf32, #tpu.memory_space<vmem>>, vector<1x2x32xf32>,
    return
  }
  func.func @transform_0(%arg0: i32) -> (i32, i32, i32, i32) {
    %c0_i32 = arith.constant 0 : i32
    %c0_i32_0 = arith.constant 0 : i32
    %c0_i32_1 = arith.constant 0 : i32
    %c0_i32_2 = arith.constant 0 : i32
    return %arg0, %c0_i32, %c0_i32_0, %c0_i32_1 : i32, i32, i32, i32
  }
  func.func @transform_1(%arg0: i32) -> (i32, i32, i32) {
    %c0_i32 = arith.constant 0 : i32
    %c0_i32_0 = arith.constant 0 : i32
    %c0_i32_1 = arith.constant 0 : i32
    %c0_i32_2 = arith.constant 0 : i32
    return %c0_i32, %c0_i32_0, %c0_i32_1 : i32, i32, i32
  }
  func.func @transform_2(%arg0: i32) -> (i32, i32, i32) {
    %c0_i32 = arith.constant 0 : i32
    %c0_i32_0 = arith.constant 0 : i32
    %c0_i32_1 = arith.constant 0 : i32
    return %arg0, %c0_i32, %c0_i32_0 : i32, i32, i32
  }
  func.func @transform_3(%arg0: i32) -> (i32, i32) {
    %c0_i32 = arith.constant 0 : i32
    %c0_i32_0 = arith.constant 0 : i32
    %c0_i32_1 = arith.constant 0 : i32
    return %c0_i32, %c0_i32_0 : i32, i32
  }
  func.func @transform_4(%arg0: i32) -> (i32, i32) {
    %c0_i32 = arith.constant 0 : i32
    %c0_i32_0 = arith.constant 0 : i32
    %c0_i32_1 = arith.constant 0 : i32
    return %c0_i32, %c0_i32_0 : i32, i32
  }
  func.func @transform_5(%arg0: i32) -> (i32, i32, i32) {
    %c0_i32 = arith.constant 0 : i32
    %c0_i32_0 = arith.constant 0 : i32
    %c0_i32_1 = arith.constant 0 : i32
    return %arg0, %c0_i32, %c0_i32_0 : i32, i32, i32
  }
  func.func @transform_6(%arg0: i32) -> (i32, i32, i32) {
    %c0_i32 = arith.constant 0 : i32
    %c0_i32_0 = arith.constant 0 : i32
    %c0_i32_1 = arith.constant 0 : i32
    return %arg0, %c0_i32, %c0_i32_0 : i32, i32, i32
  }
}

module attributes {stable_mosaic.version = 11 : i64} {
  func.func @_decoder_kernel(%arg0: i32, %arg1: memref<2x8x32xf32, #tpu.memory_space<vmem>>, %arg2: memref<2x8x32xf32, #tpu.memory_space<vmem>>, %arg3: memref<2x8xf32, #tpu.memory_space<vmem>>, %arg4: memref<4x32x32xf32, #tpu.memory_space<vmem>>, %arg5: memref<4x32x32xf32, #tpu.memory_space<vmem>>, %arg6: memref<4x1x32xf32, #tpu.memory_space<vmem>>, %arg7: memref<32x32xf32, #tpu.memory_space<vmem>>, %arg8: memref<1x32xf32, #tpu.memory_space<vmem>>, %arg9: memref<32x64xf32, #tpu.memory_space<vmem>>, %arg10: memref<32x64xf32, #tpu.memory_space<vmem>>, %arg11: memref<1x64xf32, #tpu.memory_space<vmem>>, %arg12: memref<64x16xf32, #tpu.memory_space<vmem>>, %arg13: memref<1x16xf32, #tpu.memory_space<vmem>>, %arg14: memref<1x2x8xf32, #tpu.memory_space<vmem>>, %arg15: memref<1x2x16xf32, #tpu.memory_space<vmem>>, %arg16: memref<2x32xf32, #tpu.memory_space<vmem>>, %arg17: memref<2x32xf32, #tpu.memory_space<vmem>>, %arg18: memref<2x32xf32, #tpu.memory_space<vmem>>) attributes {dimension_semantics = [#tpu.dimension_semantics<arbitrary>], iteration_bounds = array<i64: 8>, scalar_prefetch = 0 : i64, scratch_operands = 3 : i64, tpu.core_type = #tpu.core_type<tc>, window_params = [{pipeline_mode = #tpu.pipeline_mode<synchronous>, transform_indices = @transform_0, window_bounds = array<i64: 2, 8, 32>}, {pipeline_mode = #tpu.pipeline_mode<synchronous>, transform_indices = @transform_1, window_bounds = array<i64: 2, 8, 32>}, {pipeline_mode = #tpu.pipeline_mode<synchronous>, transform_indices = @transform_2, window_bounds = array<i64: 2, 8>}, {pipeline_mode = #tpu.pipeline_mode<synchronous>, transform_indices = @transform_3, window_bounds = array<i64: 4, 32, 32>}, {pipeline_mode = #tpu.pipeline_mode<synchronous>, transform_indices = @transform_4, window_bounds = array<i64: 4, 32, 32>}, {pipeline_mode = #tpu.pipeline_mode<synchronous>, transform_indices = @transform_5, window_bounds = array<i64: 4, 1, 32>}, {pipeline_mode = #tpu.pipeline_mode<synchronous>, transform_indices = @transform_6, window_bounds = array<i64: 32, 32>}, {pipeline_mode = #tpu.pipeline_mode<synchronous>, transform_indices = @transform_7, window_bounds = array<i64: 1, 32>}, {pipeline_mode = #tpu.pipeline_mode<synchronous>, transform_indices = @transform_8, window_bounds = array<i64: 32, 64>}, {pipeline_mode = #tpu.pipeline_mode<synchronous>, transform_indices = @transform_9, window_bounds = array<i64: 32, 64>}, {pipeline_mode = #tpu.pipeline_mode<synchronous>, transform_indices = @transform_10, window_bounds = array<i64: 1, 64>}, {pipeline_mode = #tpu.pipeline_mode<synchronous>, transform_indices = @transform_11, window_bounds = array<i64: 64, 16>}, {pipeline_mode = #tpu.pipeline_mode<synchronous>, transform_indices = @transform_12, window_bounds = array<i64: 1, 16>}, {transform_indices = @transform_13, window_bounds = array<i64: 1, 2, 8>}, {transform_indices = @transform_14, window_bounds = array<i64: 1, 2, 16>}]} {
    %c0_i32 = arith.constant 0 : i32
    %0 = arith.cmpi eq, %arg0, %c0_i32 : i32
    %1 = arith.extui %0 : i1 to i32
    %c0_i32_0 = arith.constant 0 : i32
    %2 = arith.cmpi ne, %1, %c0_i32_0 : i32
    scf.if %2 {
      %cst_92 = arith.constant 0.000000e+00 : f32
      %123 = vector.broadcast %cst_92 : f32 to vector<2x32xf32>
      %c0_93 = arith.constant 0 : index
      %c0_94 = arith.constant 0 : index
      %124 = vector.load %arg16[%c0_93, %c0_94] : memref<2x32xf32, #tpu.memory_space<vmem>>, vector<2x32xf32>
      tpu.vector_store %arg16[%c0_93, %c0_94], %123 {strides = array<i32>} : memref<2x32xf32, #tpu.memory_space<vmem>>, vector<2x32xf32>,
      %cst_95 = arith.constant 0.000000e+00 : f32
      %125 = vector.broadcast %cst_95 : f32 to vector<2x32xf32>
      %c0_96 = arith.constant 0 : index
      %c0_97 = arith.constant 0 : index
      %126 = vector.load %arg17[%c0_96, %c0_97] : memref<2x32xf32, #tpu.memory_space<vmem>>, vector<2x32xf32>
      tpu.vector_store %arg17[%c0_96, %c0_97], %125 {strides = array<i32>} : memref<2x32xf32, #tpu.memory_space<vmem>>, vector<2x32xf32>,
      %cst_98 = arith.constant 0.000000e+00 : f32
      %127 = vector.broadcast %cst_98 : f32 to vector<2x32xf32>
      %c0_99 = arith.constant 0 : index
      %c0_100 = arith.constant 0 : index
      %c0_101 = arith.constant 0 : index
      %128 = vector.load %arg2[%c0_99, %c0_100, %c0_101] : memref<2x8x32xf32, #tpu.memory_space<vmem>>, vector<2x8x32xf32>
      %129 = vector.shape_cast %127 : vector<2x32xf32> to vector<2x1x32xf32>
      %130 = vector.broadcast %129 : vector<2x1x32xf32> to vector<2x8x32xf32>
      %131 = arith.addf %128, %130 : vector<2x8x32xf32>
      %132 = math.tanh %131 : vector<2x8x32xf32>
      %c0_102 = arith.constant 0 : index
      %c0_103 = arith.constant 0 : index
      %133 = vector.load %arg8[%c0_102, %c0_103] : memref<1x32xf32, #tpu.memory_space<vmem>>, vector<1x32xf32>
      %134 = vector.shape_cast %133 : vector<1x32xf32> to vector<1x1x32xf32>
      %135 = vector.broadcast %134 : vector<1x1x32xf32> to vector<2x8x32xf32>
      %136 = arith.mulf %132, %135 : vector<2x8x32xf32>
      %cst_104 = arith.constant dense<0.000000e+00> : vector<2x8xf32>
      %137 = vector.multi_reduction <add>, %136, %cst_104 [2] : vector<2x8x32xf32> to vector<2x8xf32>
      %c0_105 = arith.constant 0 : index
      %c0_106 = arith.constant 0 : index
      %138 = vector.load %arg3[%c0_105, %c0_106] : memref<2x8xf32, #tpu.memory_space<vmem>>, vector<2x8xf32>
      %139 = arith.mulf %138, %137 : vector<2x8xf32>
      %cst_107 = arith.constant dense<0xFF800000> : vector<2xf32>
      %140 = vector.multi_reduction <maximumf>, %139, %cst_107 [1] : vector<2x8xf32> to vector<2xf32>
      %141 = vector.shape_cast %140 : vector<2xf32> to vector<2x1xf32>
      %142 = vector.broadcast %141 : vector<2x1xf32> to vector<2x8xf32>
      %143 = arith.subf %139, %142 : vector<2x8xf32>
      %144 = math.exp %143 : vector<2x8xf32>
      %cst_108 = arith.constant dense<0.000000e+00> : vector<2xf32>
      %145 = vector.multi_reduction <add>, %144, %cst_108 [1] : vector<2x8xf32> to vector<2xf32>
      %146 = vector.shape_cast %145 : vector<2xf32> to vector<2x1xf32>
      %147 = vector.broadcast %146 : vector<2x1xf32> to vector<2x8xf32>
      %148 = arith.divf %144, %147 : vector<2x8xf32>
      %149 = vector.shape_cast %148 : vector<2x8xf32> to vector<2x8x1xf32>
      %c0_109 = arith.constant 0 : index
      %c0_110 = arith.constant 0 : index
      %c0_111 = arith.constant 0 : index
      %150 = vector.load %arg1[%c0_109, %c0_110, %c0_111] : memref<2x8x32xf32, #tpu.memory_space<vmem>>, vector<2x8x32xf32>
      %151 = vector.broadcast %149 : vector<2x8x1xf32> to vector<2x8x32xf32>
      %152 = arith.mulf %151, %150 : vector<2x8x32xf32>
      %cst_112 = arith.constant dense<0.000000e+00> : vector<2x32xf32>
      %153 = vector.multi_reduction <add>, %152, %cst_112 [1] : vector<2x8x32xf32> to vector<2x32xf32>
      %c0_113 = arith.constant 0 : index
      %c0_114 = arith.constant 0 : index
      %154 = vector.load %arg18[%c0_113, %c0_114] : memref<2x32xf32, #tpu.memory_space<vmem>>, vector<2x32xf32>
      tpu.vector_store %arg18[%c0_113, %c0_114], %153 {strides = array<i32>} : memref<2x32xf32, #tpu.memory_space<vmem>>, vector<2x32xf32>,
    } else {
    }
    %c0 = arith.constant 0 : index
    %c0_1 = arith.constant 0 : index
    %3 = vector.load %arg16[%c0, %c0_1] : memref<2x32xf32, #tpu.memory_space<vmem>>, vector<2x32xf32>
    %c0_2 = arith.constant 0 : index
    %c0_3 = arith.constant 0 : index
    %4 = vector.load %arg17[%c0_2, %c0_3] : memref<2x32xf32, #tpu.memory_space<vmem>>, vector<2x32xf32>
    %c0_4 = arith.constant 0 : index
    %c0_5 = arith.constant 0 : index
    %5 = vector.load %arg18[%c0_4, %c0_5] : memref<2x32xf32, #tpu.memory_space<vmem>>, vector<2x32xf32>
    %c0_6 = arith.constant 0 : index
    %c0_7 = arith.constant 0 : index
    %c0_8 = arith.constant 0 : index
    %6 = vector.load %arg4[%c0_6, %c0_7, %c0_8] : memref<4x32x32xf32, #tpu.memory_space<vmem>>, vector<1x32x32xf32>
    %7 = vector.shape_cast %6 : vector<1x32x32xf32> to vector<32x32xf32>
    %cst = arith.constant dense<0.000000e+00> : vector<2x32xf32>
    %8 = tpu.matmul %3, %7, %cst {dimension_numbers = #tpu.dot_dimension_numbers<[1], [0], [0], [1], [0, 0, 1, 1], [], []>} : vector<2x32xf32>, vector<32x32xf32>, vector<2x32xf32> -> vector<2x32xf32>
    %c0_9 = arith.constant 0 : index
    %c0_10 = arith.constant 0 : index
    %c0_11 = arith.constant 0 : index
    %9 = vector.load %arg5[%c0_9, %c0_10, %c0_11] : memref<4x32x32xf32, #tpu.memory_space<vmem>>, vector<1x32x32xf32>
    %10 = vector.shape_cast %9 : vector<1x32x32xf32> to vector<32x32xf32>
    %cst_12 = arith.constant dense<0.000000e+00> : vector<2x32xf32>
    %11 = tpu.matmul %5, %10, %cst_12 {dimension_numbers = #tpu.dot_dimension_numbers<[1], [0], [0], [1], [0, 0, 1, 1], [], []>} : vector<2x32xf32>, vector<32x32xf32>, vector<2x32xf32> -> vector<2x32xf32>
    %12 = arith.addf %8, %11 : vector<2x32xf32>
    %c0_13 = arith.constant 0 : index
    %c0_14 = arith.constant 0 : index
    %c0_15 = arith.constant 0 : index
    %13 = vector.load %arg6[%c0_13, %c0_14, %c0_15] : memref<4x1x32xf32, #tpu.memory_space<vmem>>, vector<1x1x32xf32>
    %14 = vector.shape_cast %13 : vector<1x1x32xf32> to vector<1x32xf32>
    %15 = vector.broadcast %14 : vector<1x32xf32> to vector<2x32xf32>
    %16 = arith.addf %12, %15 : vector<2x32xf32>
    %17 = arith.negf %16 : vector<2x32xf32>
    %18 = math.exp %17 : vector<2x32xf32>
    %cst_16 = arith.constant 1.000000e+00 : f32
    %19 = vector.broadcast %cst_16 : f32 to vector<2x32xf32>
    %20 = arith.addf %19, %18 : vector<2x32xf32>
    %21 = arith.divf %19, %20 : vector<2x32xf32>
    %c1 = arith.constant 1 : index
    %c0_17 = arith.constant 0 : index
    %c0_18 = arith.constant 0 : index
    %22 = vector.load %arg4[%c1, %c0_17, %c0_18] : memref<4x32x32xf32, #tpu.memory_space<vmem>>, vector<1x32x32xf32>
    %23 = vector.shape_cast %22 : vector<1x32x32xf32> to vector<32x32xf32>
    %cst_19 = arith.constant dense<0.000000e+00> : vector<2x32xf32>
    %24 = tpu.matmul %3, %23, %cst_19 {dimension_numbers = #tpu.dot_dimension_numbers<[1], [0], [0], [1], [0, 0, 1, 1], [], []>} : vector<2x32xf32>, vector<32x32xf32>, vector<2x32xf32> -> vector<2x32xf32>
    %c1_20 = arith.constant 1 : index
    %c0_21 = arith.constant 0 : index
    %c0_22 = arith.constant 0 : index
    %25 = vector.load %arg5[%c1_20, %c0_21, %c0_22] : memref<4x32x32xf32, #tpu.memory_space<vmem>>, vector<1x32x32xf32>
    %26 = vector.shape_cast %25 : vector<1x32x32xf32> to vector<32x32xf32>
    %cst_23 = arith.constant dense<0.000000e+00> : vector<2x32xf32>
    %27 = tpu.matmul %5, %26, %cst_23 {dimension_numbers = #tpu.dot_dimension_numbers<[1], [0], [0], [1], [0, 0, 1, 1], [], []>} : vector<2x32xf32>, vector<32x32xf32>, vector<2x32xf32> -> vector<2x32xf32>
    %28 = arith.addf %24, %27 : vector<2x32xf32>
    %c1_24 = arith.constant 1 : index
    %c0_25 = arith.constant 0 : index
    %c0_26 = arith.constant 0 : index
    %29 = vector.load %arg6[%c1_24, %c0_25, %c0_26] : memref<4x1x32xf32, #tpu.memory_space<vmem>>, vector<1x1x32xf32>
    %30 = vector.shape_cast %29 : vector<1x1x32xf32> to vector<1x32xf32>
    %31 = vector.broadcast %30 : vector<1x32xf32> to vector<2x32xf32>
    %32 = arith.addf %28, %31 : vector<2x32xf32>
    %33 = arith.negf %32 : vector<2x32xf32>
    %34 = math.exp %33 : vector<2x32xf32>
    %cst_27 = arith.constant 1.000000e+00 : f32
    %35 = vector.broadcast %cst_27 : f32 to vector<2x32xf32>
    %36 = arith.addf %35, %34 : vector<2x32xf32>
    %37 = arith.divf %35, %36 : vector<2x32xf32>
    %c2 = arith.constant 2 : index
    %c0_28 = arith.constant 0 : index
    %c0_29 = arith.constant 0 : index
    %38 = vector.load %arg4[%c2, %c0_28, %c0_29] : memref<4x32x32xf32, #tpu.memory_space<vmem>>, vector<1x32x32xf32>
    %39 = vector.shape_cast %38 : vector<1x32x32xf32> to vector<32x32xf32>
    %cst_30 = arith.constant dense<0.000000e+00> : vector<2x32xf32>
    %40 = tpu.matmul %3, %39, %cst_30 {dimension_numbers = #tpu.dot_dimension_numbers<[1], [0], [0], [1], [0, 0, 1, 1], [], []>} : vector<2x32xf32>, vector<32x32xf32>, vector<2x32xf32> -> vector<2x32xf32>
    %c2_31 = arith.constant 2 : index
    %c0_32 = arith.constant 0 : index
    %c0_33 = arith.constant 0 : index
    %41 = vector.load %arg5[%c2_31, %c0_32, %c0_33] : memref<4x32x32xf32, #tpu.memory_space<vmem>>, vector<1x32x32xf32>
    %42 = vector.shape_cast %41 : vector<1x32x32xf32> to vector<32x32xf32>
    %cst_34 = arith.constant dense<0.000000e+00> : vector<2x32xf32>
    %43 = tpu.matmul %5, %42, %cst_34 {dimension_numbers = #tpu.dot_dimension_numbers<[1], [0], [0], [1], [0, 0, 1, 1], [], []>} : vector<2x32xf32>, vector<32x32xf32>, vector<2x32xf32> -> vector<2x32xf32>
    %44 = arith.addf %40, %43 : vector<2x32xf32>
    %c2_35 = arith.constant 2 : index
    %c0_36 = arith.constant 0 : index
    %c0_37 = arith.constant 0 : index
    %45 = vector.load %arg6[%c2_35, %c0_36, %c0_37] : memref<4x1x32xf32, #tpu.memory_space<vmem>>, vector<1x1x32xf32>
    %46 = vector.shape_cast %45 : vector<1x1x32xf32> to vector<1x32xf32>
    %47 = vector.broadcast %46 : vector<1x32xf32> to vector<2x32xf32>
    %48 = arith.addf %44, %47 : vector<2x32xf32>
    %49 = math.tanh %48 : vector<2x32xf32>
    %c3 = arith.constant 3 : index
    %c0_38 = arith.constant 0 : index
    %c0_39 = arith.constant 0 : index
    %50 = vector.load %arg4[%c3, %c0_38, %c0_39] : memref<4x32x32xf32, #tpu.memory_space<vmem>>, vector<1x32x32xf32>
    %51 = vector.shape_cast %50 : vector<1x32x32xf32> to vector<32x32xf32>
    %cst_40 = arith.constant dense<0.000000e+00> : vector<2x32xf32>
    %52 = tpu.matmul %3, %51, %cst_40 {dimension_numbers = #tpu.dot_dimension_numbers<[1], [0], [0], [1], [0, 0, 1, 1], [], []>} : vector<2x32xf32>, vector<32x32xf32>, vector<2x32xf32> -> vector<2x32xf32>
    %c3_41 = arith.constant 3 : index
    %c0_42 = arith.constant 0 : index
    %c0_43 = arith.constant 0 : index
    %53 = vector.load %arg5[%c3_41, %c0_42, %c0_43] : memref<4x32x32xf32, #tpu.memory_space<vmem>>, vector<1x32x32xf32>
    %54 = vector.shape_cast %53 : vector<1x32x32xf32> to vector<32x32xf32>
    %cst_44 = arith.constant dense<0.000000e+00> : vector<2x32xf32>
    %55 = tpu.matmul %5, %54, %cst_44 {dimension_numbers = #tpu.dot_dimension_numbers<[1], [0], [0], [1], [0, 0, 1, 1], [], []>} : vector<2x32xf32>, vector<32x32xf32>, vector<2x32xf32> -> vector<2x32xf32>
    %56 = arith.addf %52, %55 : vector<2x32xf32>
    %c3_45 = arith.constant 3 : index
    %c0_46 = arith.constant 0 : index
    %c0_47 = arith.constant 0 : index
    %57 = vector.load %arg6[%c3_45, %c0_46, %c0_47] : memref<4x1x32xf32, #tpu.memory_space<vmem>>, vector<1x1x32xf32>
    %58 = vector.shape_cast %57 : vector<1x1x32xf32> to vector<1x32xf32>
    %59 = vector.broadcast %58 : vector<1x32xf32> to vector<2x32xf32>
    %60 = arith.addf %56, %59 : vector<2x32xf32>
    %61 = arith.negf %60 : vector<2x32xf32>
    %62 = math.exp %61 : vector<2x32xf32>
    %cst_48 = arith.constant 1.000000e+00 : f32
    %63 = vector.broadcast %cst_48 : f32 to vector<2x32xf32>
    %64 = arith.addf %63, %62 : vector<2x32xf32>
    %65 = arith.divf %63, %64 : vector<2x32xf32>
    %66 = arith.mulf %37, %4 : vector<2x32xf32>
    %67 = arith.mulf %21, %49 : vector<2x32xf32>
    %68 = arith.addf %66, %67 : vector<2x32xf32>
    %69 = math.tanh %68 : vector<2x32xf32>
    %70 = arith.mulf %65, %69 : vector<2x32xf32>
    %c0_49 = arith.constant 0 : index
    %c0_50 = arith.constant 0 : index
    %71 = vector.load %arg7[%c0_49, %c0_50] : memref<32x32xf32, #tpu.memory_space<vmem>>, vector<32x32xf32>
    %cst_51 = arith.constant dense<0.000000e+00> : vector<2x32xf32>
    %72 = tpu.matmul %70, %71, %cst_51 {dimension_numbers = #tpu.dot_dimension_numbers<[1], [0], [0], [1], [0, 0, 1, 1], [], []>} : vector<2x32xf32>, vector<32x32xf32>, vector<2x32xf32> -> vector<2x32xf32>
    %c0_52 = arith.constant 0 : index
    %c0_53 = arith.constant 0 : index
    %c0_54 = arith.constant 0 : index
    %73 = vector.load %arg2[%c0_52, %c0_53, %c0_54] : memref<2x8x32xf32, #tpu.memory_space<vmem>>, vector<2x8x32xf32>
    %74 = vector.shape_cast %72 : vector<2x32xf32> to vector<2x1x32xf32>
    %75 = vector.broadcast %74 : vector<2x1x32xf32> to vector<2x8x32xf32>
    %76 = arith.addf %73, %75 : vector<2x8x32xf32>
    %77 = math.tanh %76 : vector<2x8x32xf32>
    %c0_55 = arith.constant 0 : index
    %c0_56 = arith.constant 0 : index
    %78 = vector.load %arg8[%c0_55, %c0_56] : memref<1x32xf32, #tpu.memory_space<vmem>>, vector<1x32xf32>
    %79 = vector.shape_cast %78 : vector<1x32xf32> to vector<1x1x32xf32>
    %80 = vector.broadcast %79 : vector<1x1x32xf32> to vector<2x8x32xf32>
    %81 = arith.mulf %77, %80 : vector<2x8x32xf32>
    %cst_57 = arith.constant dense<0.000000e+00> : vector<2x8xf32>
    %82 = vector.multi_reduction <add>, %81, %cst_57 [2] : vector<2x8x32xf32> to vector<2x8xf32>
    %c0_58 = arith.constant 0 : index
    %c0_59 = arith.constant 0 : index
    %83 = vector.load %arg3[%c0_58, %c0_59] : memref<2x8xf32, #tpu.memory_space<vmem>>, vector<2x8xf32>
    %84 = arith.mulf %83, %82 : vector<2x8xf32>
    %cst_60 = arith.constant dense<0xFF800000> : vector<2xf32>
    %85 = vector.multi_reduction <maximumf>, %84, %cst_60 [1] : vector<2x8xf32> to vector<2xf32>
    %86 = vector.shape_cast %85 : vector<2xf32> to vector<2x1xf32>
    %87 = vector.broadcast %86 : vector<2x1xf32> to vector<2x8xf32>
    %88 = arith.subf %84, %87 : vector<2x8xf32>
    %89 = math.exp %88 : vector<2x8xf32>
    %cst_61 = arith.constant dense<0.000000e+00> : vector<2xf32>
    %90 = vector.multi_reduction <add>, %89, %cst_61 [1] : vector<2x8xf32> to vector<2xf32>
    %91 = vector.shape_cast %90 : vector<2xf32> to vector<2x1xf32>
    %92 = vector.broadcast %91 : vector<2x1xf32> to vector<2x8xf32>
    %93 = arith.divf %89, %92 : vector<2x8xf32>
    %94 = vector.shape_cast %93 : vector<2x8xf32> to vector<2x8x1xf32>
    %c0_62 = arith.constant 0 : index
    %c0_63 = arith.constant 0 : index
    %c0_64 = arith.constant 0 : index
    %95 = vector.load %arg1[%c0_62, %c0_63, %c0_64] : memref<2x8x32xf32, #tpu.memory_space<vmem>>, vector<2x8x32xf32>
    %96 = vector.broadcast %94 : vector<2x8x1xf32> to vector<2x8x32xf32>
    %97 = arith.mulf %96, %95 : vector<2x8x32xf32>
    %cst_65 = arith.constant dense<0.000000e+00> : vector<2x32xf32>
    %98 = vector.multi_reduction <add>, %97, %cst_65 [1] : vector<2x8x32xf32> to vector<2x32xf32>
    %c0_66 = arith.constant 0 : index
    %c0_67 = arith.constant 0 : index
    %99 = vector.load %arg16[%c0_66, %c0_67] : memref<2x32xf32, #tpu.memory_space<vmem>>, vector<2x32xf32>
    tpu.vector_store %arg16[%c0_66, %c0_67], %70 {strides = array<i32>} : memref<2x32xf32, #tpu.memory_space<vmem>>, vector<2x32xf32>,
    %c0_68 = arith.constant 0 : index
    %c0_69 = arith.constant 0 : index
    %100 = vector.load %arg17[%c0_68, %c0_69] : memref<2x32xf32, #tpu.memory_space<vmem>>, vector<2x32xf32>
    tpu.vector_store %arg17[%c0_68, %c0_69], %68 {strides = array<i32>} : memref<2x32xf32, #tpu.memory_space<vmem>>, vector<2x32xf32>,
    %c0_70 = arith.constant 0 : index
    %c0_71 = arith.constant 0 : index
    %101 = vector.load %arg18[%c0_70, %c0_71] : memref<2x32xf32, #tpu.memory_space<vmem>>, vector<2x32xf32>
    tpu.vector_store %arg18[%c0_70, %c0_71], %98 {strides = array<i32>} : memref<2x32xf32, #tpu.memory_space<vmem>>, vector<2x32xf32>,
    %c0_72 = arith.constant 0 : index
    %c0_73 = arith.constant 0 : index
    %102 = vector.load %arg9[%c0_72, %c0_73] : memref<32x64xf32, #tpu.memory_space<vmem>>, vector<32x64xf32>
    %cst_74 = arith.constant dense<0.000000e+00> : vector<2x64xf32>
    %103 = tpu.matmul %70, %102, %cst_74 {dimension_numbers = #tpu.dot_dimension_numbers<[1], [0], [0], [1], [0, 0, 1, 1], [], []>} : vector<2x32xf32>, vector<32x64xf32>, vector<2x64xf32> -> vector<2x64xf32>
    %c0_75 = arith.constant 0 : index
    %c0_76 = arith.constant 0 : index
    %104 = vector.load %arg10[%c0_75, %c0_76] : memref<32x64xf32, #tpu.memory_space<vmem>>, vector<32x64xf32>
    %cst_77 = arith.constant dense<0.000000e+00> : vector<2x64xf32>
    %105 = tpu.matmul %98, %104, %cst_77 {dimension_numbers = #tpu.dot_dimension_numbers<[1], [0], [0], [1], [0, 0, 1, 1], [], []>} : vector<2x32xf32>, vector<32x64xf32>, vector<2x64xf32> -> vector<2x64xf32>
    %106 = arith.addf %103, %105 : vector<2x64xf32>
    %c0_78 = arith.constant 0 : index
    %c0_79 = arith.constant 0 : index
    %107 = vector.load %arg11[%c0_78, %c0_79] : memref<1x64xf32, #tpu.memory_space<vmem>>, vector<1x64xf32>
    %108 = vector.broadcast %107 : vector<1x64xf32> to vector<2x64xf32>
    %109 = arith.addf %106, %108 : vector<2x64xf32>
    %cst_80 = arith.constant 0.000000e+00 : f32
    %110 = vector.broadcast %cst_80 : f32 to vector<2x64xf32>
    %111 = arith.maximumf %109, %110 : vector<2x64xf32>
    %c0_81 = arith.constant 0 : index
    %c0_82 = arith.constant 0 : index
    %112 = vector.load %arg12[%c0_81, %c0_82] : memref<64x16xf32, #tpu.memory_space<vmem>>, vector<64x16xf32>
    %cst_83 = arith.constant dense<0.000000e+00> : vector<2x16xf32>
    %113 = tpu.matmul %111, %112, %cst_83 {dimension_numbers = #tpu.dot_dimension_numbers<[1], [0], [0], [1], [0, 0, 1, 1], [], []>} : vector<2x64xf32>, vector<64x16xf32>, vector<2x16xf32> -> vector<2x16xf32>
    %c0_84 = arith.constant 0 : index
    %c0_85 = arith.constant 0 : index
    %114 = vector.load %arg13[%c0_84, %c0_85] : memref<1x16xf32, #tpu.memory_space<vmem>>, vector<1x16xf32>
    %115 = vector.broadcast %114 : vector<1x16xf32> to vector<2x16xf32>
    %116 = arith.addf %113, %115 : vector<2x16xf32>
    %c0_86 = arith.constant 0 : index
    %c0_87 = arith.constant 0 : index
    %c0_88 = arith.constant 0 : index
    %117 = vector.load %arg15[%c0_86, %c0_87, %c0_88] : memref<1x2x16xf32, #tpu.memory_space<vmem>>, vector<1x2x16xf32>
    %118 = vector.shape_cast %117 : vector<1x2x16xf32> to vector<2x16xf32>
    %119 = vector.shape_cast %116 : vector<2x16xf32> to vector<1x2x16xf32>
    tpu.vector_store %arg15[%c0_86, %c0_87, %c0_88], %119 {strides = array<i32>} : memref<1x2x16xf32, #tpu.memory_space<vmem>>, vector<1x2x16xf32>,
    %c0_89 = arith.constant 0 : index
    %c0_90 = arith.constant 0 : index
    %c0_91 = arith.constant 0 : index
    %120 = vector.load %arg14[%c0_89, %c0_90, %c0_91] : memref<1x2x8xf32, #tpu.memory_space<vmem>>, vector<1x2x8xf32>
    %121 = vector.shape_cast %120 : vector<1x2x8xf32> to vector<2x8xf32>
    %122 = vector.shape_cast %93 : vector<2x8xf32> to vector<1x2x8xf32>
    tpu.vector_store %arg14[%c0_89, %c0_90, %c0_91], %122 {strides = array<i32>} : memref<1x2x8xf32, #tpu.memory_space<vmem>>, vector<1x2x8xf32>,
    return
  }
  func.func @transform_0(%arg0: i32) -> (i32, i32, i32) {
    %c0_i32 = arith.constant 0 : i32
    %c0_i32_0 = arith.constant 0 : i32
    %c0_i32_1 = arith.constant 0 : i32
    %c0_i32_2 = arith.constant 0 : i32
    return %c0_i32, %c0_i32_0, %c0_i32_1 : i32, i32, i32
  }
  func.func @transform_1(%arg0: i32) -> (i32, i32, i32) {
    %c0_i32 = arith.constant 0 : i32
    %c0_i32_0 = arith.constant 0 : i32
    %c0_i32_1 = arith.constant 0 : i32
    %c0_i32_2 = arith.constant 0 : i32
    return %c0_i32, %c0_i32_0, %c0_i32_1 : i32, i32, i32
  }
  func.func @transform_2(%arg0: i32) -> (i32, i32) {
    %c0_i32 = arith.constant 0 : i32
    %c0_i32_0 = arith.constant 0 : i32
    %c0_i32_1 = arith.constant 0 : i32
    return %c0_i32, %c0_i32_0 : i32, i32
  }
  func.func @transform_3(%arg0: i32) -> (i32, i32, i32) {
    %c0_i32 = arith.constant 0 : i32
    %c0_i32_0 = arith.constant 0 : i32
    %c0_i32_1 = arith.constant 0 : i32
    %c0_i32_2 = arith.constant 0 : i32
    return %c0_i32, %c0_i32_0, %c0_i32_1 : i32, i32, i32
  }
  func.func @transform_4(%arg0: i32) -> (i32, i32, i32) {
    %c0_i32 = arith.constant 0 : i32
    %c0_i32_0 = arith.constant 0 : i32
    %c0_i32_1 = arith.constant 0 : i32
    %c0_i32_2 = arith.constant 0 : i32
    return %c0_i32, %c0_i32_0, %c0_i32_1 : i32, i32, i32
  }
  func.func @transform_5(%arg0: i32) -> (i32, i32, i32) {
    %c0_i32 = arith.constant 0 : i32
    %c0_i32_0 = arith.constant 0 : i32
    %c0_i32_1 = arith.constant 0 : i32
    %c0_i32_2 = arith.constant 0 : i32
    return %c0_i32, %c0_i32_0, %c0_i32_1 : i32, i32, i32
  }
  func.func @transform_6(%arg0: i32) -> (i32, i32) {
    %c0_i32 = arith.constant 0 : i32
    %c0_i32_0 = arith.constant 0 : i32
    %c0_i32_1 = arith.constant 0 : i32
    return %c0_i32, %c0_i32_0 : i32, i32
  }
  func.func @transform_7(%arg0: i32) -> (i32, i32) {
    %c0_i32 = arith.constant 0 : i32
    %c0_i32_0 = arith.constant 0 : i32
    %c0_i32_1 = arith.constant 0 : i32
    return %c0_i32, %c0_i32_0 : i32, i32
  }
  func.func @transform_8(%arg0: i32) -> (i32, i32) {
    %c0_i32 = arith.constant 0 : i32
    %c0_i32_0 = arith.constant 0 : i32
    %c0_i32_1 = arith.constant 0 : i32
    return %c0_i32, %c0_i32_0 : i32, i32
  }
  func.func @transform_9(%arg0: i32) -> (i32, i32) {
    %c0_i32 = arith.constant 0 : i32
    %c0_i32_0 = arith.constant 0 : i32
    %c0_i32_1 = arith.constant 0 : i32
    return %c0_i32, %c0_i32_0 : i32, i32
  }
  func.func @transform_10(%arg0: i32) -> (i32, i32) {
    %c0_i32 = arith.constant 0 : i32
    %c0_i32_0 = arith.constant 0 : i32
    %c0_i32_1 = arith.constant 0 : i32
    return %c0_i32, %c0_i32_0 : i32, i32
  }
  func.func @transform_11(%arg0: i32) -> (i32, i32) {
    %c0_i32 = arith.constant 0 : i32
    %c0_i32_0 = arith.constant 0 : i32
    %c0_i32_1 = arith.constant 0 : i32
    return %c0_i32, %c0_i32_0 : i32, i32
  }
  func.func @transform_12(%arg0: i32) -> (i32, i32) {
    %c0_i32 = arith.constant 0 : i32
    %c0_i32_0 = arith.constant 0 : i32
    %c0_i32_1 = arith.constant 0 : i32
    return %c0_i32, %c0_i32_0 : i32, i32
  }
  func.func @transform_13(%arg0: i32) -> (i32, i32, i32) {
    %c0_i32 = arith.constant 0 : i32
    %c0_i32_0 = arith.constant 0 : i32
    %c0_i32_1 = arith.constant 0 : i32
    return %arg0, %c0_i32, %c0_i32_0 : i32, i32, i32
  }
  func.func @transform_14(%arg0: i32) -> (i32, i32, i32) {
    %c0_i32 = arith.constant 0 : i32
    %c0_i32_0 = arith.constant 0 : i32
    %c0_i32_1 = arith.constant 0 : i32
    return %arg0, %c0_i32, %c0_i32_0 : i32, i32, i32
  }
}

</mosaic_0001>

<bundles_post_ra>
// kernel: translation_forward.3
= control target key start
LH: loop header
LB: loop body
LE: loop exit
PB: predicated region body
PF: predicated region fallthrough
CT: control target
= control target key end

     0   :  { %vm25_vm0 = vcmask 130048   ;;  %s168_s1 = inlined_call_operand.vmem [shape: f32[16,128], index: 1, kind: input, shape index: {}]   ;;  %s169_s0 = inlined_call_operand.vmem [shape: f32[16,16], index: 0, kind: input, shape index: {}]   ;;  %s170_s2 = inlined_call_operand.vmem [shape: f32[1,128], index: 2, kind: input, shape index: {}]   ;;  %s171_s3 = inlined_call_operand.vmem [shape: f32[16,128], index: 3, kind: output, shape index: {}]  }
   0x1   :  { %v17_v0 = vld [vmem:[%s168_s1 + $0x8] sm:$0xff]  ;;  %v16_v1 = vld [vmem:[%s168_s1] sm:$0xff] }
   0x2   :  { %v14_v2 = vld [vmem:[%s169_s0] sm:$0xff]  ;;  %120 = vmatprep.subr.mxu0 %v17_v0  ;;  %v15_v3 = vld [vmem:[%s169_s0 + $0x8] sm:$0xff] }
   0x3   :  { %124 = vmatprep.mubr.msk.f32.mxu0 %vm25_vm0, %v14_v2  ;;  %121 = vmatpush3.msra.mxu0 %v17_v0  ;;  %v113_v4 = vld [vmem:[%s170_s2] ss:$0 sm:$0xff] }
   0x4   :  { %122 = vmatprep.subr.mxu0 %v16_v1 }
   0x5   :  { %123 = vmatpush3.msra.mxu0 %v16_v1 }
   0x6   :  { %125 = vmatmul.mubr.msk.f32.vlgmr.msra.gmra.mxu0 %vm25_vm0, %v15_v3 }
  0xc6   :  { %v126_v5 = vpop.f32.mrf.mxu0 }
  0xc7   :  { %v104_v6 = vadd.f32 %v126_v5, %v113_v4 }
  0xc8   :  { %v98_v7 = vpop.f32.mrf.mxu0 }
  0xc9   :  { %108 = vst [vmem:[%s171_s3 + $0x8] sm:$0xff] %v104_v6  ;;  %v99_v8 = vadd.f32 %v113_v4, %v98_v7 }
  0xcb   :  { %107 = vst [vmem:[%s171_s3] sm:$0xff] %v99_v8 }

// kernel: translation_forward.4
= control target key start
LH: loop header
LB: loop body
LE: loop exit
PB: predicated region body
PF: predicated region fallthrough
CT: control target
= control target key end

     0   :  { %s1011_s21 = smov 0   ;;  %s1162_s0 = inlined_call_operand.vmem [shape: f32[8,4,2,32], index: 0, kind: input, shape index: {}]   ;;  %s1163_s1 = inlined_call_operand.vmem [shape: f32[4,32,32], index: 1, kind: input, shape index: {}]   ;;  %s1164_s2 = inlined_call_operand.vmem [shape: f32[8,2,1], index: 2, kind: input, shape index: {}]   ;;  %s1165_s3 = inlined_call_operand.vmem [shape: f32[32,32], index: 3, kind: input, shape index: {}]   ;;  %s1166_s4 = inlined_call_operand.vmem [shape: f32[1,32], index: 4, kind: input, shape index: {}]   ;;  %s1167_s5 = inlined_call_operand.vmem [shape: f32[8,2,32], index: 5, kind: output, shape index: {0}]   ;;  %s1168_s6 = inlined_call_operand.vmem [shape: f32[8,2,32], index: 6, kind: output, shape index: {1}]  }
   0x1 LB: > { %s817_s22 = sadd.s32 4294967295, %s970_s21   ;;  %p821_p0 = scmp.ge.s32.totalorder %s970_s21, 1  ;;  %s970_s21 = sphi %s1011_s21, %s17_s21  }
   0x2   : > { %p224_p1 = scmp.lt.s32.totalorder %s970_s21, 9 }
   0x4   : > { %p225_p2 = pnand %p821_p0, %p224_p1 }
   0x5   : > { %p261_p3 = scmp.lt.s32.totalorder (!%p225_p2), %s817_s22, 7  ;;  %p827_p4 = scmp.ne.s32.totalorder (!%p225_p2), %s817_s22, 0 }
   0x6   : > { %228 = sbr.rel (%p225_p2) target bundleno = 475 (0x1db), region = 40 }
   0xb   : > { %s262_s23 = scalar_select %p261_p3, %s817_s22, 7 }
   0xc   : > { %281 = sbr.rel (%p827_p4) target bundleno = 19 (0x13), region = 44 }
   0xd   : > { %s854_s24 = sshll.u32 %s262_s23, 3  ;;  %s1019_s25 = sshll.u32 %s262_s23, 1 }
   0xe   : > { %s1024_s28 = scalar_lea.vmem %s1162_s0, %s854_s24  ;;  %s269_s7 = scalar_lea.vmem %s1164_s2, %s1019_s25 }
   0xf   : > { %s273_s10 = scalar_lea.vmem %s1167_s5, %s1019_s25  ;;  %s277_s13 = scalar_lea.vmem %s1168_s6, %s1019_s25 }
  0x11   : > { %vm282_vm0 = vcmask 254976   ;;  %v972_v0 = vmov 0.0  }
  0x12   : > { %283 = vst.msk [vmem:[#allocation2] sm:$0x3] %vm282_vm0, %v972_v0  ;;  %284 = vst.msk [vmem:[#allocation3] sm:$0x3] %vm282_vm0, %v972_v0 }
  0x13 PF: > { %v291_v1 = vld [vmem:[%s1163_s1 + $0x18] sm:$0xff]  ;;  %v973_v3 = vmov 0.0   ;;  %v290_v4 = vld [vmem:[%s1163_s1 + $0x10] sm:$0xff]  ;;  %v289_v6 = vld [vmem:[%s1163_s1 + $0x8] sm:$0xff]  ;;  %vm292_vm1 = vcmask 261120   ;;  %vm974_vm2 = vmmov 0  }
  0x14   : > { %v834_v2 = vld [vmem:[%s1163_s1 + $0x38] sm:$0xff]  ;;  %880 = vmatprep.subr.mxu0 %v973_v3  ;;  %891 = vmatprep.subr.mxu1 %v973_v3  ;;  %v833_v5 = vld [vmem:[%s1163_s1 + $0x30] sm:$0xff]  ;;  %v832_v7 = vld [vmem:[%s1163_s1 + $0x28] sm:$0xff]  ;;  %v975_v20 = vmov 0   ;;  %vm625_vm3 = vcmask 254976  }
  0x15   : > { %881 = vmatpush3.msra.mxu0 %v291_v1  ;;  %892 = vmatpush3.msra.mxu1 %v834_v2  ;;  %v288_v8 = vld [vmem:[%s1163_s1] sm:$0xff]  ;;  %v841_v11 = vld [vmem:[%s1163_s1 + $0x58] sm:$0xff]  ;;  %v840_v13 = vld [vmem:[%s1163_s1 + $0x50] sm:$0xff] }
  0x16   : > { %882 = vmatprep.subr.mxu0 %v973_v3  ;;  %893 = vmatprep.subr.mxu1 %v973_v3  ;;  %v831_v9 = vld [vmem:[%s1163_s1 + $0x20] sm:$0xff]  ;;  %v847_v12 = vld [vmem:[%s1163_s1 + $0x78] sm:$0xff]  ;;  %v846_v14 = vld [vmem:[%s1163_s1 + $0x70] sm:$0xff] }
  0x17   : > { %883 = vmatpush3.msra.mxu0 %v290_v4  ;;  %894 = vmatpush3.msra.mxu1 %v833_v5  ;;  %v839_v15 = vld [vmem:[%s1163_s1 + $0x48] sm:$0xff]  ;;  %v838_v17 = vld [vmem:[%s1163_s1 + $0x40] sm:$0xff]  ;;  %v639_v21 = vld [vmem:[%s1165_s3 + $0x18] sm:$0xff] }
  0x18   : > { %884 = vmatprep.subr.mxu0 %v973_v3  ;;  %895 = vmatprep.subr.mxu1 %v973_v3  ;;  %v845_v16 = vld [vmem:[%s1163_s1 + $0x68] sm:$0xff]  ;;  %v844_v18 = vld [vmem:[%s1163_s1 + $0x60] sm:$0xff]  ;;  %v638_v22 = vld [vmem:[%s1165_s3 + $0x10] sm:$0xff] }
  0x19   : > { %885 = vmatpush3.msra.mxu0 %v289_v6  ;;  %896 = vmatpush3.msra.mxu1 %v832_v7  ;;  %v285_v10 = vld [vmem:[#allocation2] sm:$0x3]  ;;  %v637_v23 = vld [vmem:[%s1165_s3 + $0x8] sm:$0xff]  ;;  %v830_v26 = vld [vmem:[%s1024_s28 + $0x2] sm:$0x3] }
  0x1a   : > { %886 = vmatprep.subr.mxu0 %v973_v3  ;;  %897 = vmatprep.subr.mxu1 %v973_v3  ;;  %v628_v19 = vld [vmem:[%s269_s7] sm:$0x3]  ;;  %v843_v35 = vld [vmem:[%s1024_s28 + $0x6] sm:$0x3]  ;;  %v837_v39 = vld [vmem:[%s1024_s28 + $0x4] sm:$0x3] }
  0x1b   : > { %887 = vmatpush3.msra.mxu0 %v288_v8  ;;  %888 = vmatprep.mubr.msk.f32.mxu0 %vm974_vm2, %v973_v3  ;;  %v636_v24 = vld [vmem:[%s1165_s3] sm:$0xff] }
  0x1c   : > { %898 = vmatpush3.msra.mxu1 %v831_v9  ;;  %899 = vmatprep.mubr.msk.f32.mxu1 %vm974_vm2, %v973_v3  ;;  %v287_v25 = vld [vmem:[%s1024_s28] sm:$0x3]  ;;  %v286_v50 = vld [vmem:[#allocation3] sm:$0x3] }
  0x1d   : > { %889 = vmatmul.mubr.msk.f32.vlgmr.msra.gmra.mxu0 %vm292_vm1, %v285_v10  ;;  %900 = vmatmul.mubr.msk.f32.vlgmr.msra.gmra.mxu1 %vm292_vm1, %v285_v10  ;;  %v850_v62 = vld [vmem:[%s1166_s4] ss:$0 sm:$0xff] }
  0x1e   : > { %902 = vmatprep.subr.mxu0 %v973_v3  ;;  %913 = vmatprep.subr.mxu1 %v973_v3 }
  0x1f   : > { %903 = vmatpush3.msra.mxu0 %v841_v11  ;;  %914 = vmatpush3.msra.mxu1 %v847_v12 }
  0x20   : > { %904 = vmatprep.subr.mxu0 %v973_v3  ;;  %915 = vmatprep.subr.mxu1 %v973_v3 }
  0x21   : > { %905 = vmatpush3.msra.mxu0 %v840_v13  ;;  %916 = vmatpush3.msra.mxu1 %v846_v14 }
  0x22   : > { %906 = vmatprep.subr.mxu0 %v973_v3  ;;  %917 = vmatprep.subr.mxu1 %v973_v3 }
  0x23   : > { %907 = vmatpush3.msra.mxu0 %v839_v15  ;;  %918 = vmatpush3.msra.mxu1 %v845_v16 }
  0x24   : > { %908 = vmatprep.subr.mxu0 %v973_v3  ;;  %919 = vmatprep.subr.mxu1 %v973_v3 }
  0x25   : > { %909 = vmatpush3.msra.mxu0 %v838_v17  ;;  %910 = vmatprep.mubr.msk.f32.mxu0 %vm974_vm2, %v973_v3 }
  0x26   : > { %920 = vmatpush3.msra.mxu1 %v844_v18  ;;  %921 = vmatprep.mubr.msk.f32.mxu1 %vm974_vm2, %v973_v3 }
  0x27   : > { %911 = vmatmul.mubr.msk.f32.vlgmr.msra.gmra.mxu0 %vm292_vm1, %v285_v10  ;;  %922 = vmatmul.mubr.msk.f32.vlgmr.msra.gmra.mxu1 %vm292_vm1, %v285_v10 }
  0x28   : > { %947 = vset.pattern.permute.xlu0 %v975_v20  ;;  %924 = vmatprep.subr.mxu0 %v973_v3 }
  0x29   : > { %631 = vperm.xlu0 %947, %v628_v19   ;;  %932 = vmatprep.mubr.msk.f32.mxu0 %vm974_vm2, %v973_v3 }
  0x2a   : > { %925 = vmatpush3.msra.mxu0 %v639_v21 }
  0x2b   : > { %926 = vmatprep.subr.mxu0 %v973_v3 }
  0x2c   : > { %927 = vmatpush3.msra.mxu0 %v638_v22 }
  0x2d   : > { %928 = vmatprep.subr.mxu0 %v973_v3 }
  0x2e   : > { %929 = vmatpush3.msra.mxu0 %v637_v23 }
  0x2f   : > { %930 = vmatprep.subr.mxu0 %v973_v3 }
  0x30   : > { %931 = vmatpush3.msra.mxu0 %v636_v24 }
  0xa4   : > { %v632_v59 = vpop.permute.xlu0 %631 }
  0xdd   : > { %v362_v27 = vpop.f32.mrf.mxu0  ;;  %v446_v28 = vpop.f32.mrf.mxu1 }
  0xde   : > { %v366_v29 = vadd.f32 %v362_v27, %v287_v25  ;;  %v450_v30 = vadd.f32 %v830_v26, %v446_v28 }
  0xdf   : > { %v890_v31 = vpop.f32.mrf.mxu0  ;;  %v901_v32 = vpop.f32.mrf.mxu1 }
  0xe0   : > { %v829_v33 = vmul.f32 -1.442695, %v366_v29  ;;  %v836_v34 = vmul.f32 -1.442695, %v450_v30 }
  0xe2   : > { %948 = vpow2.f32 %v829_v33 }
  0xe3   : > { %950 = vpow2.f32 %v836_v34 }
  0xe7   : > { %v530_v36 = vpop.f32.mrf.mxu0  ;;  %v609_v37 = vpop.f32.mrf.mxu1 }
  0xe8   : > { %v613_v38 = vadd.f32 %v843_v35, %v609_v37  ;;  %v534_v43 = vadd.f32 %v837_v39, %v530_v36 }
  0xe9   : > { %v912_v40 = vpop.f32.mrf.mxu0  ;;  %v923_v41 = vpop.f32.mrf.mxu1 }
  0xea   : > { %v849_v42 = vmul.f32 -1.442695, %v613_v38 }
  0xec   : > { %952 = vpow2.f32 %v849_v42 }
  0xed   : > { %954 = vtanh.f32 %v534_v43 }
  0xef   : > { %v949_v44 = vpop.eup %948 }
  0xf0   : > { %v951_v45 = vpop.eup %950  ;;  %v370_v46 = vadd.f32 1.0, %v949_v44 }
  0xf1   : > { %v454_v47 = vadd.f32 1.0, %v951_v45 }
  0xf2   : > { %956 = vrcp.f32 %v370_v46 }
  0xf3   : > { %958 = vrcp.f32 %v454_v47 }
  0xf9   : > { %v953_v48 = vpop.eup %952 }
  0xfa   : > { %v955_v49 = vpop.eup %954  ;;  %v617_v52 = vadd.f32 1.0, %v953_v48 }
  0xfc   : > { %960 = vrcp.f32 %v617_v52 }
  0xff   : > { %v957_v51 = vpop.eup %956 }
 0x100   : > { %v959_v53 = vpop.eup %958  ;;  %v621_v54 = vmul.f32 %v957_v51, %v955_v49 }
 0x101   : > { %v620_v55 = vmul.f32 %v959_v53, %v286_v50 }
 0x103   : > { %v622_v56 = vadd.f32 %v621_v54, %v620_v55 }
 0x105   : > { %962 = vtanh.f32 %v622_v56  ;;  %627 = vst.msk [vmem:[#allocation3] sm:$0x3] %vm625_vm3, %v622_v56 }
 0x109   : > { %v961_v57 = vpop.eup %960 }
 0x112   : > { %v963_v58 = vpop.eup %962 }
 0x113   : > { %v624_v60 = vmul.f32 %v963_v58, %v961_v57 }
 0x115   : > { %626 = vst.msk [vmem:[#allocation2] sm:$0x3] %vm625_vm3, %v624_v60  ;;  %v634_v61 = vmul.f32 %v632_v59, %v624_v60 }
 0x117   : > { %635 = vst.msk [vmem:[%s273_s10] sm:$0x3] %vm625_vm3, %v634_v61  ;;  %933 = vmatmul.mubr.msk.f32.vlgmr.msra.gmra.mxu0 %vm292_vm1, %v634_v61 }
 0x1d7   : > { %v716_v63 = vpop.f32.mrf.mxu0 }
 0x1d8   : > { %v717_v0 = vadd.f32 %v850_v62, %v716_v63 }
 0x1d9   : > { %v934_v1 = vpop.f32.mrf.mxu0 }
 0x1da   : > { %720 = vst.msk [vmem:[%s277_s13] sm:$0x3] %vm625_vm3, %v717_v0 }
 0x1db PF: > { %s17_s21 = sadd.s32 1, %s970_s21  }
 0x1dc   : > { %p14_p5 = scmp.ge.s32.totalorder %s17_s21, 10  }
 0x1de   :  { %16 = sbr.rel (!%p14_p5) target bundleno = 1 (0x1), region = 95 }

// kernel: translation_forward.5
= control target key start
LH: loop header
LB: loop body
LE: loop exit
PB: predicated region body
PF: predicated region fallthrough
CT: control target
= control target key end

     0   :  { %s2136_s29 = smov 0   ;;  %s2492_s0 = inlined_call_operand.vmem [shape: f32[2,8,32], index: 0, kind: input, shape index: {}]   ;;  %s2493_s1 = inlined_call_operand.vmem [shape: f32[2,8,32], index: 1, kind: input, shape index: {}]   ;;  %s2494_s2 = inlined_call_operand.vmem [shape: f32[2,8], index: 2, kind: input, shape index: {}]   ;;  %s2495_s3 = inlined_call_operand.vmem [shape: f32[4,32,32], index: 3, kind: input, shape index: {}]   ;;  %s2496_s4 = inlined_call_operand.vmem [shape: f32[4,32,32], index: 4, kind: input, shape index: {}]   ;;  %s2497_s5 = inlined_call_operand.vmem [shape: f32[4,1,32], index: 5, kind: input, shape index: {}]   ;;  %s2498_s6 = inlined_call_operand.vmem [shape: f32[32,32], index: 6, kind: input, shape index: {}]   ;;  %s2499_s7 = inlined_call_operand.vmem [shape: f32[1,32], index: 7, kind: input, shape index: {}]   ;;  %s2500_s8 = inlined_call_operand.vmem [shape: f32[32,64], index: 8, kind: input, shape index: {}]   ;;  %s2501_s9 = inlined_call_operand.vmem [shape: f32[32,64], index: 9, kind: input, shape index: {}]   ;;  %s2502_s10 = inlined_call_operand.vmem [shape: f32[1,64], index: 10, kind: input, shape index: {}]   ;;  %s2503_s11 = inlined_call_operand.vmem [shape: f32[64,16], index: 11, kind: input, shape index: {}]   ;;  %s2504_s12 = inlined_call_operand.vmem [shape: f32[1,16], index: 12, kind: input, shape index: {}]   ;;  %s2505_s13 = inlined_call_operand.vmem [shape: f32[8,2,8], index: 13, kind: output, shape index: {0}]   ;;  %s2506_s14 = inlined_call_operand.vmem [shape: f32[8,2,16], index: 14, kind: output, shape index: {1}]  }
   0x1 LB: > { %s1742_s30 = sadd.s32 4294967295, %s2055_s29   ;;  %p1745_p0 = scmp.ge.s32.totalorder %s2055_s29, 1  ;;  %s2055_s29 = sphi %s2136_s29, %s25_s29  }
   0x2   : > { %p405_p1 = scmp.lt.s32.totalorder %s2055_s29, 9 }
   0x4   : > { %p406_p2 = pnand %p1745_p0, %p405_p1 }
   0x5   : > { %p449_p3 = scmp.lt.s32.totalorder (!%p406_p2), %s1742_s30, 7  ;;  %p1748_p4 = scmp.ne.s32.totalorder (!%p406_p2), %s1742_s30, 0 }
   0x6   : > { %409 = sbr.rel (%p406_p2) target bundleno = 2105 (0x839), region = 72 }
   0xb   : > { %s450_s15 = scalar_select %p449_p3, %s1742_s30, 7 }
   0xc   : > { %460 = sbr.rel (%p1748_p4) target bundleno = 628 (0x274), region = 76 }
   0xd   : > { %s1746_s16 = sshll.u32 %s450_s15, 1 }
   0xe   : > { %s2147_s19 = scalar_lea.vmem %s2505_s13, %s1746_s16  ;;  %s2152_s22 = scalar_lea.vmem %s2506_s14, %s1746_s16 }
  0x11   : > { %v464_v0 = vld [vmem:[%s2493_s1] sm:$0xff]  ;;  %v465_v1 = vld [vmem:[%s2493_s1 + $0x8] sm:$0xff]  ;;  %vm479_vm0 = vcmask 261120   ;;  %v489_v9 = vlaneseq  ;;  %vm499_vm1 = vcmask 1041409   ;;  %vm503_vm2 = vcmask 58368  }
  0x12   : > { %2017 = vtanh.f32 %v464_v0  ;;  %v1749_v2 = vld [vmem:[%s2499_s7] ss:$0 sm:$0xff]  ;;  %vm461_vm3 = vcmask 254976   ;;  %v2057_v33 = vmov 0.0   ;;  %v530_v34 = vld [vmem:[%s2492_s0 + $0x8] sm:$0xff] }
  0x13   : > { %2019 = vtanh.f32 %v465_v1  ;;  %v490_v10 = vand.u32 127, %v489_v9  ;;  %v492_v11 = vshrl.u32 %v489_v9, 7  ;;  %v486_v17 = vld [vmem:[%s2494_s2] sm:$0x3]  ;;  %462 = vst.msk [vmem:[#allocation2] sm:$0x3] %vm461_vm3, %v2057_v33 }
  0x14   : > { %463 = vst.msk [vmem:[#allocation3] sm:$0x3] %vm461_vm3, %v2057_v33  ;;  %v529_v35 = vld [vmem:[%s2492_s0] sm:$0xff] }
  0x15   : > { %v493_v13 = vsub.s32 %v490_v10, %v492_v11  ;;  %v524_v27 = vsub.s32 1, %v492_v11  ;;  %v517_v28 = vsub.s32 0, %v492_v11 }
  0x1f   : > { %v2018_v3 = vpop.eup %2017 }
  0x20   : > { %v2020_v4 = vpop.eup %2019  ;;  %v477_v5 = vmul.f32 %v2018_v3, %v1749_v2 }
  0x21   : > { %v478_v6 = vmul.f32 %v2020_v4, %v1749_v2 }
  0x22   : > { %v480_v7 = vsel %vm479_vm0, %v477_v5, 0.0 }
  0x23   : > { %481 = vadd.xlane.f32.xlu0 %v480_v7  ;;  %v483_v8 = vsel %vm479_vm0, %v478_v6, 0.0 }
  0x27   : > { %484 = vadd.xlane.f32.xlu0 %v483_v8 }
  0xac   : > { %v482_v12 = vpop.xlane.xlu0 %481 }
  0xad   : > { %v494_v15 = vrot.slane %v482_v12, %v493_v13 }
  0xb0   : > { %v485_v14 = vpop.xlane.xlu0 %484 }
  0xb1   : > { %v498_v16 = vrot.slane %v485_v14, %v493_v13 }
  0xb3   : > { %v500_v18 = vsel %vm499_vm1, %v498_v16, %v494_v15 }
  0xb4   : > { %v502_v19 = vmul.f32 %v500_v18, %v486_v17 }
  0xb6   : > { %v504_v20 = vsel %vm503_vm2, %v502_v19, -inf }
  0xb7   : > { %505 = vmax.xlane.f32.xlu1 %v504_v20 }
 0x140   : > { %v506_v21 = vpop.xlane.xlu1 %505 }
 0x141   : > { %v507_v22 = vsub.f32 %v502_v19, %v506_v21 }
 0x143   : > { %v508_v23 = vmul.f32 1.442695, %v507_v22 }
 0x145   : > { %2021 = vpow2.f32 %v508_v23 }
 0x152   : > { %v2022_v24 = vpop.eup %2021 }
 0x153   : > { %v510_v25 = vsel %vm503_vm2, %v2022_v24, 0.0 }
 0x154   : > { %511 = vadd.xlane.f32.xlu1 %v510_v25 }
 0x1dd   : > { %v512_v26 = vpop.xlane.xlu1 %511 }
 0x1de   : > { %2023 = vrcp.f32 %v512_v26 }
 0x1eb   : > { %v2024_v29 = vpop.eup %2023 }
 0x1ec   : > { %v514_v30 = vmul.f32 %v2024_v29, %v2022_v24 }
 0x1ee   : > { %v525_v31 = vrot.slane %v514_v30, %v524_v27  ;;  %v518_v32 = vrot.slane %v514_v30, %v517_v28 }
 0x1f0   : > { %527 = vbcast.lane.b32.xlu1 %v525_v31, 256  ;;  %520 = vbcast.lane.b32.xlu0 %v518_v32, 256 }
 0x262   : > { %v528_v36 = vpop.permute.xlu1 %527  ;;  %v521_v37 = vpop.permute.xlu0 %520 }
 0x263   : > { %v532_v38 = vmul.f32 %v530_v34, %v528_v36  ;;  %v531_v39 = vmul.f32 %v529_v35, %v521_v37 }
 0x265   : > { %v540_v40 = vsel %vm479_vm0, %v532_v38, 0.0  ;;  %v533_v41 = vsel %vm479_vm0, %v531_v39, 0.0 }
 0x266   : > { %v541_v42 = vrot.slane %v540_v40, 4  ;;  %v534_v43 = vrot.slane %v533_v41, 4 }
 0x268   : > { %v542_v44 = vadd.f32 %v541_v42, %v540_v40  ;;  %v535_v45 = vadd.f32 %v534_v43, %v533_v41 }
 0x26a   : > { %v543_v46 = vrot.slane %v542_v44, 2  ;;  %v536_v47 = vrot.slane %v535_v45, 2 }
 0x26c   : > { %v544_v48 = vadd.f32 %v543_v46, %v542_v44  ;;  %v537_v49 = vadd.f32 %v536_v47, %v535_v45 }
 0x26e   : > { %v545_v50 = vrot.slane %v544_v48, 1  ;;  %v538_v51 = vrot.slane %v537_v49, 1 }
 0x270   : > { %v546_v52 = vadd.f32 %v545_v50, %v544_v48  ;;  %v539_v53 = vadd.f32 %v538_v51, %v537_v49 }
 0x272   : > { %v549_v54 = vsel %vm499_vm1, %v546_v52, %v539_v53 }
 0x273   : > { %551 = vst.msk [vmem:[#allocation4] sm:$0x3] %vm461_vm3, %v549_v54 }
 0x274 PF: > { %v562_v55 = vld [vmem:[%s2496_s4 + $0x18] sm:$0xff]  ;;  %v2058_v57 = vmov 0.0   ;;  %v561_v58 = vld [vmem:[%s2496_s4 + $0x10] sm:$0xff]  ;;  %v560_v60 = vld [vmem:[%s2496_s4 + $0x8] sm:$0xff]  ;;  %vm563_vm4 = vcmask 261120   ;;  %vm2059_vm5 = vmmov 0  }
 0x275   : > { %v558_v56 = vld [vmem:[%s2495_s3 + $0x18] sm:$0xff]  ;;  %1865 = vmatprep.subr.mxu0 %v2058_v57  ;;  %1876 = vmatprep.subr.mxu1 %v2058_v57  ;;  %v557_v59 = vld [vmem:[%s2495_s3 + $0x10] sm:$0xff]  ;;  %v556_v61 = vld [vmem:[%s2495_s3 + $0x8] sm:$0xff]  ;;  %vm1411_vm6 = vcmask 254976   ;;  %vm1363_vm7 = vcmask 1041409   ;;  %vm1367_vm8 = vcmask 58368  }
 0x276   : > { %1866 = vmatpush3.msra.mxu0 %v562_v55  ;;  %1877 = vmatpush3.msra.mxu1 %v558_v56  ;;  %v559_v62 = vld [vmem:[%s2496_s4] sm:$0xff]  ;;  %v1761_v2 = vld [vmem:[%s2496_s4 + $0x38] sm:$0xff]  ;;  %v1760_v4 = vld [vmem:[%s2496_s4 + $0x30] sm:$0xff]  ;;  %vm1593_vm9 = vcmask 523264   ;;  %vm1667_vm10 = vcmask 123904  }
 0x277   : > { %1867 = vmatprep.subr.mxu0 %v2058_v57  ;;  %1878 = vmatprep.subr.mxu1 %v2058_v57  ;;  %v555_v63 = vld [vmem:[%s2495_s3] sm:$0xff]  ;;  %v1757_v3 = vld [vmem:[%s2495_s3 + $0x38] sm:$0xff]  ;;  %v1756_v5 = vld [vmem:[%s2495_s3 + $0x30] sm:$0xff] }
 0x278   : > { %1868 = vmatpush3.msra.mxu0 %v561_v58  ;;  %1879 = vmatpush3.msra.mxu1 %v557_v59  ;;  %v2215_v1 = vld [vmem:[#allocation2] sm:$0x3]  ;;  %v1759_v6 = vld [vmem:[%s2496_s4 + $0x28] sm:$0xff]  ;;  %v1774_v10 = vld [vmem:[%s2496_s4 + $0x58] sm:$0xff] }
 0x279   : > { %1869 = vmatprep.subr.mxu0 %v2058_v57  ;;  %1880 = vmatprep.subr.mxu1 %v2058_v57  ;;  %v1755_v7 = vld [vmem:[%s2495_s3 + $0x28] sm:$0xff]  ;;  %v1758_v8 = vld [vmem:[%s2496_s4 + $0x20] sm:$0xff]  ;;  %v1770_v11 = vld [vmem:[%s2495_s3 + $0x58] sm:$0xff] }
 0x27a   : > { %1870 = vmatpush3.msra.mxu0 %v560_v60  ;;  %1881 = vmatpush3.msra.mxu1 %v556_v61  ;;  %v2213_v0 = vld [vmem:[#allocation4] sm:$0x3]  ;;  %v1773_v12 = vld [vmem:[%s2496_s4 + $0x50] sm:$0xff]  ;;  %v1772_v14 = vld [vmem:[%s2496_s4 + $0x48] sm:$0xff] }
 0x27b   : > { %1871 = vmatprep.subr.mxu0 %v2058_v57  ;;  %1882 = vmatprep.subr.mxu1 %v2058_v57  ;;  %v1754_v9 = vld [vmem:[%s2495_s3 + $0x20] sm:$0xff]  ;;  %v1769_v13 = vld [vmem:[%s2495_s3 + $0x50] sm:$0xff]  ;;  %v1768_v15 = vld [vmem:[%s2495_s3 + $0x48] sm:$0xff] }
 0x27c   : > { %1872 = vmatpush3.msra.mxu0 %v559_v62  ;;  %1873 = vmatprep.mubr.msk.f32.mxu0 %vm2059_vm5, %v2058_v57  ;;  %v1771_v16 = vld [vmem:[%s2496_s4 + $0x40] sm:$0xff]  ;;  %v1786_v18 = vld [vmem:[%s2496_s4 + $0x78] sm:$0xff]  ;;  %v1785_v20 = vld [vmem:[%s2496_s4 + $0x70] sm:$0xff] }
 0x27d   : > { %1883 = vmatpush3.msra.mxu1 %v555_v63  ;;  %1884 = vmatprep.mubr.msk.f32.mxu1 %vm2059_vm5, %v2058_v57  ;;  %v1767_v17 = vld [vmem:[%s2495_s3 + $0x40] sm:$0xff]  ;;  %v1782_v19 = vld [vmem:[%s2495_s3 + $0x78] sm:$0xff]  ;;  %v1781_v21 = vld [vmem:[%s2495_s3 + $0x70] sm:$0xff] }
 0x27e   : > { %1874 = vmatmul.mubr.msk.f32.vlgmr.msra.gmra.mxu0 %vm563_vm4, %v2213_v0  ;;  %1885 = vmatmul.mubr.msk.f32.vlgmr.msra.gmra.mxu1 %vm563_vm4, %v2215_v1  ;;  %v1784_v22 = vld [vmem:[%s2496_s4 + $0x68] sm:$0xff]  ;;  %v1783_v24 = vld [vmem:[%s2496_s4 + $0x60] sm:$0xff]  ;;  %v1222_v26 = vld [vmem:[%s2498_s6 + $0x18] sm:$0xff] }
 0x27f   : > { %1887 = vmatprep.subr.mxu0 %v2058_v57  ;;  %1898 = vmatprep.subr.mxu1 %v2058_v57  ;;  %v1780_v23 = vld [vmem:[%s2495_s3 + $0x68] sm:$0xff]  ;;  %v1779_v25 = vld [vmem:[%s2495_s3 + $0x60] sm:$0xff]  ;;  %v1221_v27 = vld [vmem:[%s2498_s6 + $0x10] sm:$0xff] }
 0x280   : > { %1888 = vmatpush3.msra.mxu0 %v1761_v2  ;;  %1899 = vmatpush3.msra.mxu1 %v1757_v3  ;;  %v1220_v28 = vld [vmem:[%s2498_s6 + $0x8] sm:$0xff]  ;;  %v1219_v29 = vld [vmem:[%s2498_s6] sm:$0xff] }
 0x281   : > { %1889 = vmatprep.subr.mxu0 %v2058_v57  ;;  %1900 = vmatprep.subr.mxu1 %v2058_v57  ;;  %v1752_v32 = vld [vmem:[%s2497_s5] ss:$0 sm:$0xff]  ;;  %v1765_v40 = vld [vmem:[%s2497_s5 + $0x1] ss:$0 sm:$0xff]  ;;  %v1778_v52 = vld [vmem:[%s2497_s5 + $0x2] ss:$0 sm:$0xff] }
 0x282   : > { %1890 = vmatpush3.msra.mxu0 %v1760_v4  ;;  %1901 = vmatpush3.msra.mxu1 %v1756_v5  ;;  %v1790_v59 = vld [vmem:[%s2497_s5 + $0x3] ss:$0 sm:$0xff] }
 0x283   : > { %1891 = vmatprep.subr.mxu0 %v2058_v57  ;;  %1902 = vmatprep.subr.mxu1 %v2058_v57  ;;  %v553_v4 = vld [vmem:[#allocation3] sm:$0x3] }
 0x284   : > { %1892 = vmatpush3.msra.mxu0 %v1759_v6  ;;  %1903 = vmatpush3.msra.mxu1 %v1755_v7 }
 0x285   : > { %1893 = vmatprep.subr.mxu0 %v2058_v57  ;;  %1904 = vmatprep.subr.mxu1 %v2058_v57 }
 0x286   : > { %1894 = vmatpush3.msra.mxu0 %v1758_v8  ;;  %1895 = vmatprep.mubr.msk.f32.mxu0 %vm2059_vm5, %v2058_v57 }
 0x287   : > { %1905 = vmatpush3.msra.mxu1 %v1754_v9  ;;  %1906 = vmatprep.mubr.msk.f32.mxu1 %vm2059_vm5, %v2058_v57 }
 0x288   : > { %1896 = vmatmul.mubr.msk.f32.vlgmr.msra.gmra.mxu0 %vm563_vm4, %v2213_v0  ;;  %1907 = vmatmul.mubr.msk.f32.vlgmr.msra.gmra.mxu1 %vm563_vm4, %v2215_v1 }
 0x289   : > { %1909 = vmatprep.subr.mxu0 %v2058_v57  ;;  %1920 = vmatprep.subr.mxu1 %v2058_v57 }
 0x28a   : > { %1910 = vmatpush3.msra.mxu0 %v1774_v10  ;;  %1921 = vmatpush3.msra.mxu1 %v1770_v11 }
 0x28b   : > { %1911 = vmatprep.subr.mxu0 %v2058_v57  ;;  %1922 = vmatprep.subr.mxu1 %v2058_v57 }
 0x28c   : > { %1912 = vmatpush3.msra.mxu0 %v1773_v12  ;;  %1923 = vmatpush3.msra.mxu1 %v1769_v13 }
 0x28d   : > { %1913 = vmatprep.subr.mxu0 %v2058_v57  ;;  %1924 = vmatprep.subr.mxu1 %v2058_v57 }
 0x28e   : > { %1914 = vmatpush3.msra.mxu0 %v1772_v14  ;;  %1925 = vmatpush3.msra.mxu1 %v1768_v15  ;;  %v1422_v14 = vld [vmem:[%s2500_s8 + $0x18] sm:$0xff]  ;;  %v1421_v15 = vld [vmem:[%s2500_s8 + $0x10] sm:$0xff] }
 0x28f   : > { %1915 = vmatprep.subr.mxu0 %v2058_v57  ;;  %1926 = vmatprep.subr.mxu1 %v2058_v57 }
 0x290   : > { %1916 = vmatpush3.msra.mxu0 %v1771_v16  ;;  %1927 = vmatpush3.msra.mxu1 %v1767_v17  ;;  %v1420_v16 = vld [vmem:[%s2500_s8 + $0x8] sm:$0xff]  ;;  %v1419_v17 = vld [vmem:[%s2500_s8] sm:$0xff] }
 0x291   : > { %1917 = vmatprep.mubr.msk.f32.mxu0 %vm2059_vm5, %v2058_v57  ;;  %1928 = vmatprep.mubr.msk.f32.mxu1 %vm2059_vm5, %v2058_v57 }
 0x292   : > { %1931 = vmatprep.subr.mxu0 %v2058_v57  ;;  %1942 = vmatprep.subr.mxu1 %v2058_v57 }
 0x293   : > { %1918 = vmatmul.mubr.msk.f32.vlgmr.msra.gmra.mxu0 %vm563_vm4, %v2213_v0  ;;  %1929 = vmatmul.mubr.msk.f32.vlgmr.msra.gmra.mxu1 %vm563_vm4, %v2215_v1 }
 0x294   : > { %1932 = vmatpush3.msra.mxu0 %v1786_v18  ;;  %1943 = vmatpush3.msra.mxu1 %v1782_v19  ;;  %v2060_v18 = vmov 1966171168  }
 0x295   : > { %1933 = vmatprep.subr.mxu0 %v2058_v57  ;;  %1944 = vmatprep.subr.mxu1 %v2058_v57  ;;  %v1300_v19 = vunpack.c.l.s4 %v2060_v18 }
 0x296   : > { %1934 = vmatpush3.msra.mxu0 %v1785_v20  ;;  %1945 = vmatpush3.msra.mxu1 %v1781_v21  ;;  %v1302_v20 = vlaneseq }
 0x297   : > { %1935 = vmatprep.subr.mxu0 %v2058_v57  ;;  %1946 = vmatprep.subr.mxu1 %v2058_v57  ;;  %v1301_v21 = vunpack.c.0.s8 %v1300_v19 }
 0x298   : > { %1936 = vmatpush3.msra.mxu0 %v1784_v22  ;;  %1947 = vmatpush3.msra.mxu1 %v1780_v23  ;;  %v1303_v22 = vshrl.u32 %v1302_v20, 7 }
 0x299   : > { %1937 = vmatprep.subr.mxu0 %v2058_v57  ;;  %1948 = vmatprep.subr.mxu1 %v2058_v57 }
 0x29a   : > { %1938 = vmatpush3.msra.mxu0 %v1783_v24  ;;  %1939 = vmatprep.mubr.msk.f32.mxu0 %vm2059_vm5, %v2058_v57  ;;  %v1304_v23 = vsub.s32 %v1301_v21, %v1303_v22 }
 0x29b   : > { %1949 = vmatpush3.msra.mxu1 %v1779_v25  ;;  %1950 = vmatprep.mubr.msk.f32.mxu1 %vm2059_vm5, %v2058_v57 }
 0x29c   : > { %1940 = vmatmul.mubr.msk.f32.vlgmr.msra.gmra.mxu0 %vm563_vm4, %v2213_v0  ;;  %1951 = vmatmul.mubr.msk.f32.vlgmr.msra.gmra.mxu1 %vm563_vm4, %v2215_v1 }
 0x29d   : > { %1953 = vmatprep.subr.mxu0 %v2058_v57  ;;  %1961 = vmatprep.mubr.msk.f32.mxu0 %vm2059_vm5, %v2058_v57 }
 0x29e   : > { %1964 = vmatprep.subr.mxu1 %v2058_v57  ;;  %1972 = vmatprep.mubr.msk.f32.mxu1 %vm2059_vm5, %v2058_v57 }
 0x29f   : > { %1954 = vmatpush3.msra.mxu0 %v1222_v26  ;;  %v1323_v26 = vsub.s32 0, %v1303_v22 }
 0x2a0   : > { %1955 = vmatprep.subr.mxu0 %v2058_v57 }
 0x2a1   : > { %1956 = vmatpush3.msra.mxu0 %v1221_v27 }
 0x2a2   : > { %1957 = vmatprep.subr.mxu0 %v2058_v57 }
 0x2a3   : > { %1958 = vmatpush3.msra.mxu0 %v1220_v28 }
 0x2a4   : > { %1959 = vmatprep.subr.mxu0 %v2058_v57 }
 0x2a5   : > { %1960 = vmatpush3.msra.mxu0 %v1219_v29 }
 0x2a6   : > { %1975 = vmatprep.subr.mxu0 %v2058_v57 }
 0x33e   : > { %v633_v30 = vpop.f32.mrf.mxu0  ;;  %v706_v31 = vpop.f32.mrf.mxu1 }
 0x33f   : > { %v707_v33 = vadd.f32 %v706_v31, %v633_v30  ;;  %v1296_v30 = vld [vmem:[%s2493_s1] sm:$0xff] }
 0x340   : > { %v1875_v34 = vpop.f32.mrf.mxu0  ;;  %v1886_v35 = vpop.f32.mrf.mxu1 }
 0x341   : > { %v717_v36 = vadd.f32 %v1752_v32, %v707_v33  ;;  %v1297_v33 = vld [vmem:[%s2493_s1 + $0x8] sm:$0xff] }
 0x343   : > { %v1753_v37 = vmul.f32 -1.442695, %v717_v36 }
 0x345   : > { %2025 = vpow2.f32 %v1753_v37 }
 0x348   : > { %v800_v38 = vpop.f32.mrf.mxu0  ;;  %v870_v39 = vpop.f32.mrf.mxu1 }
 0x349   : > { %v871_v41 = vadd.f32 %v870_v39, %v800_v38  ;;  %v1793_v39 = vld [vmem:[%s2499_s7] ss:$0 sm:$0xff] }
 0x34a   : > { %v1897_v42 = vpop.f32.mrf.mxu0  ;;  %v1908_v43 = vpop.f32.mrf.mxu1 }
 0x34b   : > { %v882_v44 = vadd.f32 %v1765_v40, %v871_v41 }
 0x34d   : > { %v1766_v45 = vmul.f32 -1.442695, %v882_v44 }
 0x34f   : > { %2027 = vpow2.f32 %v1766_v45 }
 0x352   : > { %v2026_v48 = vpop.eup %2025 }
 0x353   : > { %v965_v46 = vpop.f32.mrf.mxu0  ;;  %v1035_v47 = vpop.f32.mrf.mxu1  ;;  %v721_v53 = vadd.f32 1.0, %v2026_v48 }
 0x354   : > { %v1036_v49 = vadd.f32 %v1035_v47, %v965_v46  ;;  %v1354_v46 = vand.u32 127, %v1302_v20 }
 0x355   : > { %v1919_v50 = vpop.f32.mrf.mxu0  ;;  %v1930_v51 = vpop.f32.mrf.mxu1  ;;  %2029 = vrcp.f32 %v721_v53 }
 0x356   : > { %v1047_v54 = vadd.f32 %v1778_v52, %v1036_v49  ;;  %v1357_v48 = vsub.s32 %v1354_v46, %v1303_v22  ;;  %v1350_v52 = vld [vmem:[%s2494_s2] sm:$0x3] }
 0x358   : > { %2031 = vtanh.f32 %v1047_v54 }
 0x35c   : > { %v2028_v55 = vpop.eup %2027  ;;  %v1125_v56 = vpop.f32.mrf.mxu0 }
 0x35d   : > { %v1195_v58 = vpop.f32.mrf.mxu1  ;;  %v886_v60 = vadd.f32 1.0, %v2028_v55 }
 0x35e   : > { %v1196_v61 = vadd.f32 %v1195_v58, %v1125_v56  ;;  %v1941_v62 = vpop.f32.mrf.mxu0 }
 0x35f   : > { %v1952_v63 = vpop.f32.mrf.mxu1  ;;  %2033 = vrcp.f32 %v886_v60 }
 0x360   : > { %v1207_v0 = vadd.f32 %v1790_v59, %v1196_v61  ;;  %v1388_v63 = vsub.s32 1, %v1303_v22 }
 0x362   : > { %v1791_v1 = vmul.f32 -1.442695, %v1207_v0  ;;  %v2030_v2 = vpop.eup %2029 }
 0x364   : > { %2035 = vpow2.f32 %v1791_v1 }
 0x365   : > { %v2032_v3 = vpop.eup %2031 }
 0x366   : > { %v1215_v7 = vmul.f32 %v2032_v3, %v2030_v2  ;;  %v1426_v2 = vld [vmem:[%s2501_s9 + $0x18] sm:$0xff] }
 0x367   : > { %1965 = vmatpush3.msra.mxu1 %v1426_v2 }
 0x368   : > { %1966 = vmatprep.subr.mxu1 %v2058_v57 }
 0x36c   : > { %v2034_v5 = vpop.eup %2033 }
 0x36d   : > { %v1214_v6 = vmul.f32 %v2034_v5, %v553_v4  ;;  %v1425_v5 = vld [vmem:[%s2501_s9 + $0x10] sm:$0xff] }
 0x36e   : > { %1967 = vmatpush3.msra.mxu1 %v1425_v5 }
 0x36f   : > { %v1216_v8 = vadd.f32 %v1215_v7, %v1214_v6  ;;  %v1424_v6 = vld [vmem:[%s2501_s9 + $0x8] sm:$0xff]  ;;  %1968 = vmatprep.subr.mxu1 %v2058_v57  ;;  %v1423_v7 = vld [vmem:[%s2501_s9] sm:$0xff] }
 0x370   : > { %1969 = vmatpush3.msra.mxu1 %v1424_v6 }
 0x371   : > { %v2036_v9 = vpop.eup %2035  ;;  %2037 = vtanh.f32 %v1216_v8  ;;  %1413 = vst.msk [vmem:[#allocation3] sm:$0x3] %vm1411_vm6, %v1216_v8  ;;  %1970 = vmatprep.subr.mxu1 %v2058_v57  ;;  %v1394_v8 = vld [vmem:[%s2492_s0 + $0x8] sm:$0xff] }
 0x372   : > { %v1211_v10 = vadd.f32 1.0, %v2036_v9  ;;  %1971 = vmatpush3.msra.mxu1 %v1423_v7  ;;  %v1393_v9 = vld [vmem:[%s2492_s0] sm:$0xff] }
 0x373   : > { %1986 = vmatprep.subr.mxu1 %v2058_v57 }
 0x374   : > { %2039 = vrcp.f32 %v1211_v10 }
 0x37e   : > { %v2038_v11 = vpop.eup %2037 }
 0x381   : > { %v2040_v12 = vpop.eup %2039 }
 0x382   : > { %v1218_v13 = vmul.f32 %v2040_v12, %v2038_v11 }
 0x384   : > { %1962 = vmatmul.mubr.msk.f32.vlgmr.msra.gmra.mxu0 %vm563_vm4, %v1218_v13  ;;  %1412 = vst.msk [vmem:[#allocation2] sm:$0x3] %vm1411_vm6, %v1218_v13 }
 0x385   : > { %1976 = vmatpush3.msra.mxu0 %v1422_v14  ;;  %1983 = vmatprep.mubr.msk.f32.mxu0 %vm2059_vm5, %v2058_v57 }
 0x386   : > { %1977 = vmatprep.subr.mxu0 %v2058_v57 }
 0x387   : > { %1978 = vmatpush3.msra.mxu0 %v1421_v15 }
 0x388   : > { %1979 = vmatprep.subr.mxu0 %v2058_v57 }
 0x389   : > { %1980 = vmatpush3.msra.mxu0 %v1420_v16 }
 0x38a   : > { %1981 = vmatprep.subr.mxu0 %v2058_v57 }
 0x38b   : > { %1982 = vmatpush3.msra.mxu0 %v1419_v17 }
 0x38c   : > { %1984 = vmatmul.mubr.msk.f32.vlgmr.msra.gmra.mxu0 %vm563_vm4, %v1218_v13 }
 0x444   : > { %v1292_v24 = vpop.f32.mrf.mxu0 }
 0x445   : > { %v1305_v25 = vrot.slane %v1292_v24, %v1304_v23 }
 0x446   : > { %v1963_v27 = vpop.f32.mrf.mxu0 }
 0x447   : > { %v1306_v28 = vcombine.high %v1305_v25, %v1305_v25  ;;  %v1313_v29 = vrot.slane %v1305_v25, %v1304_v23 }
 0x449   : > { %v1320_v31 = vrot.slane %v1306_v28, %v1304_v23  ;;  %v1324_v32 = vrot.slane %v1313_v29, %v1323_v26  ;;  %v1585_v28 = vld [vmem:[%s2503_s11 + $0x38] sm:$0xff] }
 0x44b   : > { %v1328_v34 = vrot.slane %v1320_v31, %v1323_v26  ;;  %v1331_v35 = vadd.f32 %v1324_v32, %v1296_v30  ;;  %v1584_v30 = vld [vmem:[%s2503_s11 + $0x30] sm:$0xff]  ;;  %v1583_v31 = vld [vmem:[%s2503_s11 + $0x28] sm:$0xff]  ;;  %v1582_v32 = vld [vmem:[%s2503_s11 + $0x20] sm:$0xff] }
 0x44c   : > { %v2406_v36 = vpop.f32.mrf.mxu0 }
 0x44d   : > { %v1332_v37 = vadd.f32 %v1328_v34, %v1297_v33  ;;  %2041 = vtanh.f32 %v1331_v35  ;;  %v1581_v33 = vld [vmem:[%s2503_s11 + $0x18] sm:$0xff]  ;;  %v1580_v34 = vld [vmem:[%s2503_s11 + $0x10] sm:$0xff]  ;;  %v1579_v35 = vld [vmem:[%s2503_s11 + $0x8] sm:$0xff] }
 0x44e   : > { %v1985_v38 = vpop.f32.mrf.mxu0 }
 0x44f   : > { %2043 = vtanh.f32 %v1332_v37  ;;  %v1578_v37 = vld [vmem:[%s2503_s11] sm:$0xff] }
 0x45a   : > { %v2042_v40 = vpop.eup %2041 }
 0x45b   : > { %v1342_v41 = vmul.f32 %v2042_v40, %v1793_v39 }
 0x45c   : > { %v2044_v42 = vpop.eup %2043 }
 0x45d   : > { %v1344_v43 = vsel %vm563_vm4, %v1342_v41, 0.0  ;;  %v1343_v44 = vmul.f32 %v2044_v42, %v1793_v39  ;;  %v1796_v39 = vld [vmem:[%s2502_s10] ss:$0 sm:$0xff] }
 0x45e   : > { %1345 = vadd.xlane.f32.xlu0 %v1344_v43 }
 0x45f   : > { %v1347_v45 = vsel %vm563_vm4, %v1343_v44, 0.0  ;;  %v1797_v44 = vld [vmem:[%s2504_s12] ss:$0 sm:$0xff] }
 0x462   : > { %1348 = vadd.xlane.f32.xlu0 %v1347_v45 }
 0x4e7   : > { %v1346_v47 = vpop.xlane.xlu0 %1345 }
 0x4e8   : > { %v1358_v50 = vrot.slane %v1346_v47, %v1357_v48 }
 0x4eb   : > { %v1349_v49 = vpop.xlane.xlu0 %1348 }
 0x4ec   : > { %v1362_v51 = vrot.slane %v1349_v49, %v1357_v48 }
 0x4ee   : > { %v1364_v53 = vsel %vm1363_vm7, %v1362_v51, %v1358_v50 }
 0x4ef   : > { %v1366_v54 = vmul.f32 %v1364_v53, %v1350_v52 }
 0x4f1   : > { %v1368_v55 = vsel %vm1367_vm8, %v1366_v54, -inf }
 0x4f2   : > { %1369 = vmax.xlane.f32.xlu1 %v1368_v55 }
 0x57b   : > { %v1370_v56 = vpop.xlane.xlu1 %1369 }
 0x57c   : > { %v1371_v58 = vsub.f32 %v1366_v54, %v1370_v56 }
 0x57e   : > { %v1372_v59 = vmul.f32 1.442695, %v1371_v58 }
 0x580   : > { %2045 = vpow2.f32 %v1372_v59 }
 0x58d   : > { %v2046_v60 = vpop.eup %2045 }
 0x58e   : > { %v1374_v61 = vsel %vm1367_vm8, %v2046_v60, 0.0 }
 0x58f   : > { %1375 = vadd.xlane.f32.xlu1 %v1374_v61 }
 0x618   : > { %v1376_v62 = vpop.xlane.xlu1 %1375 }
 0x619   : > { %2047 = vrcp.f32 %v1376_v62 }
 0x626   : > { %v2048_v0 = vpop.eup %2047 }
 0x627   : > { %v1378_v1 = vmul.f32 %v2048_v0, %v2046_v60 }
 0x629   : > { %v1389_v3 = vrot.slane %v1378_v1, %v1388_v63  ;;  %1669 = vst.msk [vmem:[%s2147_s19] sm:$0x3] %vm1367_vm8, %v1378_v1  ;;  %v1382_v4 = vrot.slane %v1378_v1, %v1323_v26 }
 0x62b   : > { %1391 = vbcast.lane.b32.xlu1 %v1389_v3, 256  ;;  %1384 = vbcast.lane.b32.xlu0 %v1382_v4, 256 }
 0x69d   : > { %v1392_v10 = vpop.permute.xlu1 %1391  ;;  %v1385_v11 = vpop.permute.xlu0 %1384 }
 0x69e   : > { %v1396_v12 = vmul.f32 %v1394_v8, %v1392_v10  ;;  %v1395_v13 = vmul.f32 %v1393_v9, %v1385_v11 }
 0x6a0   : > { %v1404_v14 = vsel %vm563_vm4, %v1396_v12, 0.0  ;;  %v1397_v15 = vsel %vm563_vm4, %v1395_v13, 0.0 }
 0x6a1   : > { %v1405_v16 = vrot.slane %v1404_v14, 4  ;;  %v1398_v17 = vrot.slane %v1397_v15, 4 }
 0x6a3   : > { %v1406_v18 = vadd.f32 %v1405_v16, %v1404_v14  ;;  %v1399_v19 = vadd.f32 %v1398_v17, %v1397_v15 }
 0x6a5   : > { %v1407_v20 = vrot.slane %v1406_v18, 2  ;;  %v1400_v21 = vrot.slane %v1399_v19, 2 }
 0x6a7   : > { %v1408_v22 = vadd.f32 %v1407_v20, %v1406_v18  ;;  %v1401_v23 = vadd.f32 %v1400_v21, %v1399_v19 }
 0x6a9   : > { %v1409_v24 = vrot.slane %v1408_v22, 1  ;;  %v1402_v25 = vrot.slane %v1401_v23, 1 }
 0x6ab   : > { %v1410_v26 = vadd.f32 %v1409_v24, %v1408_v22  ;;  %v1403_v27 = vadd.f32 %v1402_v25, %v1401_v23 }
 0x6ad   : > { %v1416_v29 = vsel %vm1363_vm7, %v1410_v26, %v1403_v27 }
 0x6ae   : > { %1418 = vst.msk [vmem:[#allocation4] sm:$0x3] %vm1411_vm6, %v1416_v29  ;;  %1973 = vmatmul.mubr.msk.f32.vlgmr.msra.gmra.mxu1 %vm563_vm4, %v1416_v29 }
 0x6af   : > { %1987 = vmatpush3.msra.mxu1 %v1585_v28  ;;  %2002 = vmatprep.mubr.msk.f32.mxu1 %vm2059_vm5, %v2058_v57 }
 0x6b0   : > { %1988 = vmatprep.subr.mxu1 %v2058_v57 }
 0x6b1   : > { %1989 = vmatpush3.msra.mxu1 %v1584_v30 }
 0x6b2   : > { %1990 = vmatprep.subr.mxu1 %v2058_v57 }
 0x6b3   : > { %1991 = vmatpush3.msra.mxu1 %v1583_v31 }
 0x6b4   : > { %1992 = vmatprep.subr.mxu1 %v2058_v57 }
 0x6b5   : > { %1993 = vmatpush3.msra.mxu1 %v1582_v32 }
 0x6b6   : > { %1994 = vmatprep.subr.mxu1 %v2058_v57 }
 0x6b7   : > { %1995 = vmatpush3.msra.mxu1 %v1581_v33 }
 0x6b8   : > { %1996 = vmatprep.subr.mxu1 %v2058_v57 }
 0x6b9   : > { %1997 = vmatpush3.msra.mxu1 %v1580_v34 }
 0x6ba   : > { %1998 = vmatprep.subr.mxu1 %v2058_v57 }
 0x6bb   : > { %1999 = vmatpush3.msra.mxu1 %v1579_v35 }
 0x6bc   : > { %2000 = vmatprep.subr.mxu1 %v2058_v57 }
 0x6bd   : > { %2001 = vmatpush3.msra.mxu1 %v1578_v37 }
 0x76e   : > { %v1495_v38 = vpop.f32.mrf.mxu1 }
 0x76f   : > { %v1566_v40 = vadd.f32 %v2406_v36, %v1495_v38 }
 0x770   : > { %v1974_v41 = vpop.f32.mrf.mxu1 }
 0x771   : > { %v1576_v42 = vadd.f32 %v1796_v39, %v1566_v40 }
 0x773   : > { %v1577_v43 = vmax.f32 %v1576_v42, 0.0 }
 0x775   : > { %2003 = vmatmul.mubr.msk.f32.vlgmr.msra.gmra.mxu1 %vm1593_vm9, %v1577_v43 }
 0x835   : > { %v1663_v45 = vpop.f32.mrf.mxu1 }
 0x836   : > { %v1664_v57 = vadd.f32 %v1797_v44, %v1663_v45 }
 0x837   : > { %v2004_v46 = vpop.f32.mrf.mxu1 }
 0x838   : > { %1668 = vst.msk [vmem:[%s2152_s22] sm:$0x3] %vm1667_vm10, %v1664_v57 }
 0x839 PF: > { %s25_s29 = sadd.s32 1, %s2055_s29  }
 0x83a   : > { %p22_p5 = scmp.ge.s32.totalorder %s25_s29, 10  }
 0x83c   :  { %24 = sbr.rel (!%p22_p5) target bundleno = 1 (0x1), region = 124 }

</bundles_post_ra>
